<compile_context>
chip_gen: v5e
topology: v5e:2x2
jax: 0.10.0
libtpu: 0.0.40
codegen_flags: <defaults>
</compile_context>

<pallas_src>
import functools

import jax
import jax.numpy as jnp
from jax import lax
from jax.experimental import pallas as pl
from jax.experimental.pallas import tpu as pltpu


def _hg_resblock_kernel(identity_skip,
                        xc_ref, xt_ref, xb_ref,
                        s1_ref, t1_ref,
                        w1_ref, b1_ref,
                        w2_ref, b2_ref,
                        w3_ref, b3_ref,
                        *rest):
    if identity_skip:
        (o_ref,) = rest
        wskip_ref = bskip_ref = None
    else:
        wskip_ref, bskip_ref, o_ref = rest

    _, TH, W, Cin = xc_ref.shape          # padded channel counts
    Cmid = w1_ref.shape[1]
    Cout = w3_ref.shape[1]

    j = pl.program_id(1)
    last_j = pl.num_programs(1) - 1

    s1 = s1_ref[...]                      # (1, Cin) f32  folded bn1 scale
    t1 = t1_ref[...]                      # (1, Cin) f32  folded bn1 bias
    w1 = w1_ref[...]                      # (Cin, Cmid) bf16 (bn2 folded in)
    b1 = b1_ref[...]                      # (1, Cmid) f32

    def stage1(x2d):
        # bn1 -> relu -> conv1 (1x1, bn2 folded) -> relu ; bf16 MXU, f32 acc.
        v = jnp.maximum(x2d * s1 + t1, 0.0).astype(jnp.bfloat16)
        u = jnp.dot(v, w1, preferred_element_type=jnp.float32) + b1
        return jnp.maximum(u, 0.0)

    xc = xc_ref[0].reshape(TH * W, Cin)               # (TH*W, Cin) f32
    uc = stage1(xc)                                   # (TH*W, Cmid) f32
    ut = stage1(xt_ref[0].reshape(W, Cin))            # halo row above
    ub = stage1(xb_ref[0].reshape(W, Cin))            # halo row below
    ut = jnp.where(j == 0, 0.0, ut)                   # zero pad at image top
    ub = jnp.where(j == last_j, 0.0, ub)              # zero pad at image bottom

    # conv2 input (halo included) kept flattened as ((TH+2)*W, Cmid), with an
    # 8-row zero block on each side so the +/-1 column shifts below are plain
    # static slices (no materialized padded buffer, no per-tap relayout).
    total = (TH + 2) * W
    z8 = jnp.zeros((8, Cmid), jnp.float32)
    u_ext = jnp.concatenate([z8, ut, uc, ub, z8], axis=0)

    col = lax.broadcasted_iota(jnp.int32, (TH + 2, W, 1), 1).reshape(total, 1)
    u_x0 = u_ext[8:8 + total]                                    # value at x
    u_xm1 = jnp.where(col == 0, 0.0, u_ext[7:7 + total])         # value at x-1
    u_xp1 = jnp.where(col == W - 1, 0.0, u_ext[9:9 + total])     # value at x+1
    taps = (u_xm1.astype(jnp.bfloat16),
            u_x0.astype(jnp.bfloat16),
            u_xp1.astype(jnp.bfloat16))

    # 3x3 conv (bn3 folded into w2/b2): 9 MXU matmuls over aligned row windows.
    acc = None
    for ky in range(3):
        for kx in range(3):
            t = taps[kx][ky * W:ky * W + TH * W]      # (TH*W, Cmid) bf16
            d = jnp.dot(t, w2_ref[ky, kx], preferred_element_type=jnp.float32)
            acc = d if acc is None else acc + d
    y = jnp.maximum(acc + b2_ref[...], 0.0).astype(jnp.bfloat16)

    # conv3 (1x1)
    out = jnp.dot(y, w3_ref[...], preferred_element_type=jnp.float32) + b3_ref[...]

    # skip path: identity (no matmul) or 1x1 projection.
    if identity_skip:
        out = out + xc
    else:
        out = out + jnp.dot(xc.astype(jnp.bfloat16), wskip_ref[...],
                            preferred_element_type=jnp.float32) + bskip_ref[...]

    o_ref[0] = out.reshape(TH, W, Cout).astype(o_ref.dtype)


def _round_up(n, m):
    return (n + m - 1) // m * m


def _default_tile_h(h):
    # Modest default tile: bounds the per-step VMEM footprint (safe for v7x's
    # 64 MiB VMEM at realistic hourglass channel counts) while still giving
    # several grid steps for pipelining.  Pass tile_h explicitly for bigger
    # tiles on v6e (128 MiB VMEM) or smaller ones on v5e.
    for th in (32, 16, 8):
        if h % th == 0 and h // th >= 2:
            return th
    return h


def prepare_params(rp, eps=1e-5, lane=128):
    """Fold eval-mode BN, fold bn2/bn3 into conv1/conv2, pad channels to
    multiples of `lane`, and cast matmul weights to bfloat16."""

    def fold_bn(p):
        s = p["gamma"] / jnp.sqrt(p["var"] + eps)
        return s, p["beta"] - p["mean"] * s

    s1, t1 = fold_bn(rp["bn1"])
    s2, t2 = fold_bn(rp["bn2"])
    s3, t3 = fold_bn(rp["bn3"])

    cin, cmid = rp["w1"].shape
    cout = rp["w3"].shape[1]
    cin_p, cmid_p, cout_p = (_round_up(c, lane) for c in (cin, cmid, cout))

    # Wrapper-side constant folding: bn2 -> conv1, bn3 -> conv2.
    w1f = rp["w1"] * s2[None, :]
    b1f = rp["b1"] * s2 + t2
    w2f = rp["w2"] * s3[None, None, None, :]
    b2f = rp["b2"] * s3 + t3

    def pad_mat(a, r, c):
        return jnp.pad(a, ((0, r - a.shape[0]), (0, c - a.shape[1])))

    def pad_row(a, c):
        return jnp.pad(a, (0, c - a.shape[0]))[None, :]

    prepared = dict(
        identity_skip="wskip" not in rp,
        cin=cin, cmid=cmid, cout=cout,
        cin_p=cin_p, cmid_p=cmid_p, cout_p=cout_p,
        bn1_s=pad_row(s1, cin_p).astype(jnp.float32),
        bn1_b=pad_row(t1, cin_p).astype(jnp.float32),
        w1=pad_mat(w1f, cin_p, cmid_p).astype(jnp.bfloat16),
        b1=pad_row(b1f, cmid_p).astype(jnp.float32),
        w2=jnp.pad(w2f, ((0, 0), (0, 0), (0, cmid_p - cmid),
                         (0, cmid_p - cmid))).astype(jnp.bfloat16),
        b2=pad_row(b2f, cmid_p).astype(jnp.float32),
        w3=pad_mat(rp["w3"], cmid_p, cout_p).astype(jnp.bfloat16),
        b3=pad_row(rp["b3"], cout_p).astype(jnp.float32),
    )
    if not prepared["identity_skip"]:
        prepared["wskip"] = pad_mat(rp["wskip"], cin_p, cout_p).astype(jnp.bfloat16)
        prepared["bskip"] = pad_row(rp["bskip"], cout_p).astype(jnp.float32)
    return prepared


def hg_resblock(x_nhwc, p, tile_h=None):
    """HgResBlock forward. x_nhwc: (B, H, W, Cin) float32, prepared params p."""
    B, H, W, Cin = x_nhwc.shape
    assert Cin == p["cin"]
    cin_p, cmid_p, cout_p = p["cin_p"], p["cmid_p"], p["cout_p"]
    identity = p["identity_skip"]

    if tile_h is None:
        tile_h = _default_tile_h(H)
    assert H % tile_h == 0, "tile_h must divide H"
    TH = tile_h
    n_th = H // TH

    x = x_nhwc.astype(jnp.float32)
    if cin_p != Cin:
        x = jnp.pad(x, ((0, 0), (0, 0), (0, 0), (0, cin_p - Cin)))

    def const_spec(shape):
        nd = len(shape)
        return pl.BlockSpec(shape, lambda b, j, _nd=nd: (0,) * _nd)

    in_specs = [
        # tile rows
        pl.BlockSpec((1, TH, W, cin_p), lambda b, j: (b, j, 0, 0)),
        # 1-row halos above / below (clamped at the image boundary; the
        # kernel zeroes them there)
        pl.BlockSpec((1, 1, W, cin_p),
                     lambda b, j: (b, jnp.maximum(j * TH - 1, 0), 0, 0)),
        pl.BlockSpec((1, 1, W, cin_p),
                     lambda b, j: (b, jnp.minimum(j * TH + TH, H - 1), 0, 0)),
        const_spec((1, cin_p)), const_spec((1, cin_p)),               # bn1
        const_spec((cin_p, cmid_p)), const_spec((1, cmid_p)),         # conv1 (+bn2)
        const_spec((3, 3, cmid_p, cmid_p)), const_spec((1, cmid_p)),  # conv2 (+bn3)
        const_spec((cmid_p, cout_p)), const_spec((1, cout_p)),        # conv3
    ]
    operands = [x, x, x,
                p["bn1_s"], p["bn1_b"], p["w1"], p["b1"],
                p["w2"], p["b2"], p["w3"], p["b3"]]
    if not identity:
        in_specs += [const_spec((cin_p, cout_p)), const_spec((1, cout_p))]
        operands += [p["wskip"], p["bskip"]]

    out_spec = pl.BlockSpec((1, TH, W, cout_p), lambda b, j: (b, j, 0, 0))

    out = pl.pallas_call(
        functools.partial(_hg_resblock_kernel, identity),
        out_shape=jax.ShapeDtypeStruct((B, H, W, cout_p), jnp.float32),
        grid_spec=pltpu.PrefetchScalarGridSpec(
            num_scalar_prefetch=0,
            grid=(B, n_th),
            in_specs=in_specs,
            out_specs=out_spec,
        ),
        compiler_params=pltpu.CompilerParams(
            dimension_semantics=("parallel", "parallel"),
            vmem_limit_bytes=40 * 1024 * 1024,
        ),
    )(*operands)

    return out[..., :p["cout"]]


def make_raw_params(key, inplanes, outplanes):
    """Deterministic synthetic parameters mirroring the PyTorch module."""
    mid = outplanes // 2
    ks = iter(jax.random.split(key, 24))

    def rnd(shape, scale=0.1):
        return (scale * jax.random.normal(next(ks), shape)).astype(jnp.float32)

    def bn(c):
        return dict(gamma=1.0 + rnd((c,)), beta=rnd((c,)), mean=rnd((c,)),
                    var=1.0 + jnp.abs(rnd((c,), 0.5)))

    p = dict(
        bn1=bn(inplanes),
        w1=rnd((inplanes, mid)), b1=rnd((mid,)),
        bn2=bn(mid),
        w2=rnd((3, 3, mid, mid)), b2=rnd((mid,)),
        bn3=bn(mid),
        w3=rnd((mid, outplanes)), b3=rnd((outplanes,)),
    )
    if inplanes != outplanes:
        p["wskip"] = rnd((inplanes, outplanes))
        p["bskip"] = rnd((outplanes,))
    return p


def ref_forward(x, rp, eps=1e-5):
    """Pure-JAX NHWC reference mirroring the PyTorch forward (eval-mode BN)."""

    def bn(v, p):
        return (v - p["mean"]) / jnp.sqrt(p["var"] + eps) * p["gamma"] + p["beta"]

    def conv1x1(v, w, b):
        return jnp.einsum("bhwc,cd->bhwd", v, w) + b

    def conv3x3(v, w, b):
        return lax.conv_general_dilated(
            v, w, (1, 1), [(1, 1), (1, 1)],
            dimension_numbers=("NHWC", "HWIO", "NHWC")) + b

    out = jax.nn.relu(bn(x, rp["bn1"]))
    out = conv1x1(out, rp["w1"], rp["b1"])
    out = jax.nn.relu(bn(out, rp["bn2"]))
    out = conv3x3(out, rp["w2"], rp["b2"])
    out = jax.nn.relu(bn(out, rp["bn3"]))
    out = conv1x1(out, rp["w3"], rp["b3"])
    res = conv1x1(x, rp["wskip"], rp["bskip"]) if "wskip" in rp else x
    return out + res


if __name__ == "__main__":
    key = jax.random.PRNGKey(0)
    kx1, kp1, kx2, kp2 = jax.random.split(key, 4)

    # Case 1: inplanes != outplanes -> 1x1 projection on the skip path.
    B, Cin, Cout, HW = 2, 4, 8, 16
    x_nchw = jax.random.normal(kx1, (B, Cin, HW, HW), dtype=jnp.float32)  # torch layout
    x_nhwc = jnp.transpose(x_nchw, (0, 2, 3, 1))                          # kernel layout
    raw = make_raw_params(kp1, Cin, Cout)
    out = jax.block_until_ready(hg_resblock(x_nhwc, prepare_params(raw)))
    ref = jax.block_until_ready(ref_forward(x_nhwc, raw))
    assert out.shape == (B, HW, HW, Cout)
    err = float(jnp.max(jnp.abs(out - ref)))
    assert err < 2e-2, f"projection-skip case mismatch: {err}"

    # Case 2: inplanes == outplanes -> identity skip (no matmul on skip path).
    Cin2 = Cout2 = 8
    x2 = jnp.transpose(
        jax.random.normal(kx2, (B, Cin2, HW, HW), dtype=jnp.float32), (0, 2, 3, 1))
    raw2 = make_raw_params(kp2, Cin2, Cout2)
    out2 = jax.block_until_ready(hg_resblock(x2, prepare_params(raw2)))
    ref2 = jax.block_until_ready(ref_forward(x2, raw2))
    err2 = float(jnp.max(jnp.abs(out2 - ref2)))
    assert err2 < 2e-2, f"identity-skip case mismatch: {err2}"

    # back to NCHW if a PyTorch-shaped result is needed
    out_nchw = jnp.transpose(out, (0, 3, 1, 2))
    assert out_nchw.shape == (B, Cout, HW, HW)

    print("KERNEL_OK")
</pallas_src>

<mosaic_0001>
module attributes {stable_mosaic.version = 11 : i64} {
  func.func @_hg_resblock_kernel(%arg0: i32, %arg1: i32, %arg2: memref<1x8x16x128xf32, #tpu.memory_space<vmem>>, %arg3: memref<1x1x16x128xf32, #tpu.memory_space<vmem>>, %arg4: memref<1x1x16x128xf32, #tpu.memory_space<vmem>>, %arg5: memref<1x128xf32, #tpu.memory_space<vmem>>, %arg6: memref<1x128xf32, #tpu.memory_space<vmem>>, %arg7: memref<128x128xbf16, #tpu.memory_space<vmem>>, %arg8: memref<1x128xf32, #tpu.memory_space<vmem>>, %arg9: memref<3x3x128x128xbf16, #tpu.memory_space<vmem>>, %arg10: memref<1x128xf32, #tpu.memory_space<vmem>>, %arg11: memref<128x128xbf16, #tpu.memory_space<vmem>>, %arg12: memref<1x128xf32, #tpu.memory_space<vmem>>, %arg13: memref<128x128xbf16, #tpu.memory_space<vmem>>, %arg14: memref<1x128xf32, #tpu.memory_space<vmem>>, %arg15: memref<1x8x16x128xf32, #tpu.memory_space<vmem>>) attributes {dimension_semantics = [#tpu.dimension_semantics<parallel>, #tpu.dimension_semantics<parallel>], iteration_bounds = array<i64: 2, 2>, scalar_prefetch = 0 : i64, scratch_operands = 0 : i64, tpu.core_type = #tpu.core_type<tc>, window_params = [{transform_indices = @transform_0, window_bounds = array<i64: 1, 8, 16, 128>}, {transform_indices = @transform_1, window_bounds = array<i64: 1, 1, 16, 128>}, {transform_indices = @transform_2, window_bounds = array<i64: 1, 1, 16, 128>}, {pipeline_mode = #tpu.pipeline_mode<synchronous>, transform_indices = @transform_3, window_bounds = array<i64: 1, 128>}, {pipeline_mode = #tpu.pipeline_mode<synchronous>, transform_indices = @transform_4, window_bounds = array<i64: 1, 128>}, {pipeline_mode = #tpu.pipeline_mode<synchronous>, transform_indices = @transform_5, window_bounds = array<i64: 128, 128>}, {pipeline_mode = #tpu.pipeline_mode<synchronous>, transform_indices = @transform_6, window_bounds = array<i64: 1, 128>}, {pipeline_mode = #tpu.pipeline_mode<synchronous>, transform_indices = @transform_7, window_bounds = array<i64: 3, 3, 128, 128>}, {pipeline_mode = #tpu.pipeline_mode<synchronous>, transform_indices = @transform_8, window_bounds = array<i64: 1, 128>}, {pipeline_mode = #tpu.pipeline_mode<synchronous>, transform_indices = @transform_9, window_bounds = array<i64: 128, 128>}, {pipeline_mode = #tpu.pipeline_mode<synchronous>, transform_indices = @transform_10, window_bounds = array<i64: 1, 128>}, {pipeline_mode = #tpu.pipeline_mode<synchronous>, transform_indices = @transform_11, window_bounds = array<i64: 128, 128>}, {pipeline_mode = #tpu.pipeline_mode<synchronous>, transform_indices = @transform_12, window_bounds = array<i64: 1, 128>}, {transform_indices = @transform_13, window_bounds = array<i64: 1, 8, 16, 128>}]} {
    %c0 = arith.constant 0 : index
    %c0_0 = arith.constant 0 : index
    %0 = vector.load %arg5[%c0, %c0_0] : memref<1x128xf32, #tpu.memory_space<vmem>>, vector<1x128xf32>
    %c0_1 = arith.constant 0 : index
    %c0_2 = arith.constant 0 : index
    %1 = vector.load %arg6[%c0_1, %c0_2] : memref<1x128xf32, #tpu.memory_space<vmem>>, vector<1x128xf32>
    %c0_3 = arith.constant 0 : index
    %c0_4 = arith.constant 0 : index
    %2 = vector.load %arg7[%c0_3, %c0_4] : memref<128x128xbf16, #tpu.memory_space<vmem>>, vector<128x128xbf16>
    %c0_5 = arith.constant 0 : index
    %c0_6 = arith.constant 0 : index
    %3 = vector.load %arg8[%c0_5, %c0_6] : memref<1x128xf32, #tpu.memory_space<vmem>>, vector<1x128xf32>
    %c0_7 = arith.constant 0 : index
    %c0_8 = arith.constant 0 : index
    %c0_9 = arith.constant 0 : index
    %c0_10 = arith.constant 0 : index
    %4 = vector.load %arg2[%c0_7, %c0_8, %c0_9, %c0_10] : memref<1x8x16x128xf32, #tpu.memory_space<vmem>>, vector<1x8x16x128xf32>
    %5 = vector.shape_cast %4 : vector<1x8x16x128xf32> to vector<8x16x128xf32>
    %6 = vector.shape_cast %5 : vector<8x16x128xf32> to vector<128x128xf32>
    %7 = vector.broadcast %0 : vector<1x128xf32> to vector<128x128xf32>
    %8 = arith.mulf %6, %7 : vector<128x128xf32>
    %9 = vector.broadcast %1 : vector<1x128xf32> to vector<128x128xf32>
    %10 = arith.addf %8, %9 : vector<128x128xf32>
    %cst = arith.constant 0.000000e+00 : f32
    %11 = vector.broadcast %cst : f32 to vector<128x128xf32>
    %12 = arith.maximumf %10, %11 : vector<128x128xf32>
    %13 = arith.truncf %12 : vector<128x128xf32> to vector<128x128xbf16>
    %cst_11 = arith.constant dense<0.000000e+00> : vector<128x128xf32>
    %14 = tpu.matmul %13, %2, %cst_11 {dimension_numbers = #tpu.dot_dimension_numbers<[1], [0], [0], [1], [0, 0, 1, 1], [], []>} : vector<128x128xbf16>, vector<128x128xbf16>, vector<128x128xf32> -> vector<128x128xf32>
    %15 = vector.broadcast %3 : vector<1x128xf32> to vector<128x128xf32>
    %16 = arith.addf %14, %15 : vector<128x128xf32>
    %cst_12 = arith.constant 0.000000e+00 : f32
    %17 = vector.broadcast %cst_12 : f32 to vector<128x128xf32>
    %18 = arith.maximumf %16, %17 : vector<128x128xf32>
    %c0_13 = arith.constant 0 : index
    %c0_14 = arith.constant 0 : index
    %c0_15 = arith.constant 0 : index
    %c0_16 = arith.constant 0 : index
    %19 = vector.load %arg3[%c0_13, %c0_14, %c0_15, %c0_16] : memref<1x1x16x128xf32, #tpu.memory_space<vmem>>, vector<1x1x16x128xf32>
    %20 = vector.shape_cast %19 : vector<1x1x16x128xf32> to vector<1x16x128xf32>
    %21 = vector.shape_cast %20 : vector<1x16x128xf32> to vector<16x128xf32>
    %22 = vector.broadcast %0 : vector<1x128xf32> to vector<16x128xf32>
    %23 = arith.mulf %21, %22 : vector<16x128xf32>
    %24 = vector.broadcast %1 : vector<1x128xf32> to vector<16x128xf32>
    %25 = arith.addf %23, %24 : vector<16x128xf32>
    %cst_17 = arith.constant 0.000000e+00 : f32
    %26 = vector.broadcast %cst_17 : f32 to vector<16x128xf32>
    %27 = arith.maximumf %25, %26 : vector<16x128xf32>
    %28 = arith.truncf %27 : vector<16x128xf32> to vector<16x128xbf16>
    %cst_18 = arith.constant dense<0.000000e+00> : vector<16x128xf32>
    %29 = tpu.matmul %28, %2, %cst_18 {dimension_numbers = #tpu.dot_dimension_numbers<[1], [0], [0], [1], [0, 0, 1, 1], [], []>} : vector<16x128xbf16>, vector<128x128xbf16>, vector<16x128xf32> -> vector<16x128xf32>
    %30 = vector.broadcast %3 : vector<1x128xf32> to vector<16x128xf32>
    %31 = arith.addf %29, %30 : vector<16x128xf32>
    %cst_19 = arith.constant 0.000000e+00 : f32
    %32 = vector.broadcast %cst_19 : f32 to vector<16x128xf32>
    %33 = arith.maximumf %31, %32 : vector<16x128xf32>
    %c0_20 = arith.constant 0 : index
    %c0_21 = arith.constant 0 : index
    %c0_22 = arith.constant 0 : index
    %c0_23 = arith.constant 0 : index
    %34 = vector.load %arg4[%c0_20, %c0_21, %c0_22, %c0_23] : memref<1x1x16x128xf32, #tpu.memory_space<vmem>>, vector<1x1x16x128xf32>
    %35 = vector.shape_cast %34 : vector<1x1x16x128xf32> to vector<1x16x128xf32>
    %36 = vector.shape_cast %35 : vector<1x16x128xf32> to vector<16x128xf32>
    %37 = vector.broadcast %0 : vector<1x128xf32> to vector<16x128xf32>
    %38 = arith.mulf %36, %37 : vector<16x128xf32>
    %39 = vector.broadcast %1 : vector<1x128xf32> to vector<16x128xf32>
    %40 = arith.addf %38, %39 : vector<16x128xf32>
    %cst_24 = arith.constant 0.000000e+00 : f32
    %41 = vector.broadcast %cst_24 : f32 to vector<16x128xf32>
    %42 = arith.maximumf %40, %41 : vector<16x128xf32>
    %43 = arith.truncf %42 : vector<16x128xf32> to vector<16x128xbf16>
    %cst_25 = arith.constant dense<0.000000e+00> : vector<16x128xf32>
    %44 = tpu.matmul %43, %2, %cst_25 {dimension_numbers = #tpu.dot_dimension_numbers<[1], [0], [0], [1], [0, 0, 1, 1], [], []>} : vector<16x128xbf16>, vector<128x128xbf16>, vector<16x128xf32> -> vector<16x128xf32>
    %45 = vector.broadcast %3 : vector<1x128xf32> to vector<16x128xf32>
    %46 = arith.addf %44, %45 : vector<16x128xf32>
    %cst_26 = arith.constant 0.000000e+00 : f32
    %47 = vector.broadcast %cst_26 : f32 to vector<16x128xf32>
    %48 = arith.maximumf %46, %47 : vector<16x128xf32>
    %c0_i32 = arith.constant 0 : i32
    %49 = arith.cmpi eq, %arg1, %c0_i32 : i32
    %cst_27 = arith.constant 0.000000e+00 : f32
    %50 = vector.broadcast %cst_27 : f32 to vector<16x128xf32>
    %51 = arith.select %49, %50, %33 : vector<16x128xf32>
    %c1_i32 = arith.constant 1 : i32
    %52 = arith.cmpi eq, %arg1, %c1_i32 : i32
    %cst_28 = arith.constant 0.000000e+00 : f32
    %53 = vector.broadcast %cst_28 : f32 to vector<16x128xf32>
    %54 = arith.select %52, %53, %48 : vector<16x128xf32>
    %cst_29 = arith.constant 0.000000e+00 : f32
    %55 = vector.broadcast %cst_29 : f32 to vector<8x128xf32>
    %56 = tpu.concatenate %55, %51, %18, %54, %55 in 0 : vector<8x128xf32>, vector<16x128xf32>, vector<128x128xf32>, vector<16x128xf32>, vector<8x128xf32> -> vector<176x128xf32>
    %57 = tpu.iota {dimensions = array<i32: 1>} : vector<10x16x1xi32>
    %58 = vector.shape_cast %57 : vector<10x16x1xi32> to vector<160x1xi32>
    %59 = vector.extract_strided_slice %56 {offsets = [8, 0], sizes = [160, 128], strides = [1, 1]} : vector<176x128xf32> to vector<160x128xf32>
    %c0_i32_30 = arith.constant 0 : i32
    %60 = vector.broadcast %c0_i32_30 : i32 to vector<160x1xi32>
    %61 = arith.cmpi eq, %58, %60 : vector<160x1xi32>
    %62 = vector.extract_strided_slice %56 {offsets = [7, 0], sizes = [160, 128], strides = [1, 1]} : vector<176x128xf32> to vector<160x128xf32>
    %cst_31 = arith.constant 0.000000e+00 : f32
    %63 = vector.shape_cast %61 : vector<160x1xi1> to vector<160x1xi1>
    %64 = vector.broadcast %63 : vector<160x1xi1> to vector<160x128xi1>
    %65 = vector.broadcast %cst_31 : f32 to vector<160x128xf32>
    %66 = arith.select %64, %65, %62 : vector<160x128xi1>, vector<160x128xf32>
    %c15_i32 = arith.constant 15 : i32
    %67 = vector.broadcast %c15_i32 : i32 to vector<160x1xi32>
    %68 = arith.cmpi eq, %58, %67 : vector<160x1xi32>
    %69 = vector.extract_strided_slice %56 {offsets = [9, 0], sizes = [160, 128], strides = [1, 1]} : vector<176x128xf32> to vector<160x128xf32>
    %cst_32 = arith.constant 0.000000e+00 : f32
    %70 = vector.shape_cast %68 : vector<160x1xi1> to vector<160x1xi1>
    %71 = vector.broadcast %70 : vector<160x1xi1> to vector<160x128xi1>
    %72 = vector.broadcast %cst_32 : f32 to vector<160x128xf32>
    %73 = arith.select %71, %72, %69 : vector<160x128xi1>, vector<160x128xf32>
    %74 = arith.truncf %66 : vector<160x128xf32> to vector<160x128xbf16>
    %75 = arith.truncf %59 : vector<160x128xf32> to vector<160x128xbf16>
    %76 = arith.truncf %73 : vector<160x128xf32> to vector<160x128xbf16>
    %77 = vector.extract_strided_slice %74 {offsets = [0, 0], sizes = [128, 128], strides = [1, 1]} : vector<160x128xbf16> to vector<128x128xbf16>
    %c0_33 = arith.constant 0 : index
    %c0_34 = arith.constant 0 : index
    %c0_35 = arith.constant 0 : index
    %c0_36 = arith.constant 0 : index
    %78 = vector.load %arg9[%c0_33, %c0_34, %c0_35, %c0_36] : memref<3x3x128x128xbf16, #tpu.memory_space<vmem>>, vector<1x1x128x128xbf16>
    %79 = vector.shape_cast %78 : vector<1x1x128x128xbf16> to vector<128x128xbf16>
    %cst_37 = arith.constant dense<0.000000e+00> : vector<128x128xf32>
    %80 = tpu.matmul %77, %79, %cst_37 {dimension_numbers = #tpu.dot_dimension_numbers<[1], [0], [0], [1], [0, 0, 1, 1], [], []>} : vector<128x128xbf16>, vector<128x128xbf16>, vector<128x128xf32> -> vector<128x128xf32>
    %81 = vector.extract_strided_slice %75 {offsets = [0, 0], sizes = [128, 128], strides = [1, 1]} : vector<160x128xbf16> to vector<128x128xbf16>
    %c0_38 = arith.constant 0 : index
    %c1 = arith.constant 1 : index
    %c0_39 = arith.constant 0 : index
    %c0_40 = arith.constant 0 : index
    %82 = vector.load %arg9[%c0_38, %c1, %c0_39, %c0_40] : memref<3x3x128x128xbf16, #tpu.memory_space<vmem>>, vector<1x1x128x128xbf16>
    %83 = vector.shape_cast %82 : vector<1x1x128x128xbf16> to vector<128x128xbf16>
    %cst_41 = arith.constant dense<0.000000e+00> : vector<128x128xf32>
    %84 = tpu.matmul %81, %83, %cst_41 {dimension_numbers = #tpu.dot_dimension_numbers<[1], [0], [0], [1], [0, 0, 1, 1], [], []>} : vector<128x128xbf16>, vector<128x128xbf16>, vector<128x128xf32> -> vector<128x128xf32>
    %85 = arith.addf %80, %84 : vector<128x128xf32>
    %86 = vector.extract_strided_slice %76 {offsets = [0, 0], sizes = [128, 128], strides = [1, 1]} : vector<160x128xbf16> to vector<128x128xbf16>
    %c0_42 = arith.constant 0 : index
    %c2 = arith.constant 2 : index
    %c0_43 = arith.constant 0 : index
    %c0_44 = arith.constant 0 : index
    %87 = vector.load %arg9[%c0_42, %c2, %c0_43, %c0_44] : memref<3x3x128x128xbf16, #tpu.memory_space<vmem>>, vector<1x1x128x128xbf16>
    %88 = vector.shape_cast %87 : vector<1x1x128x128xbf16> to vector<128x128xbf16>
    %cst_45 = arith.constant dense<0.000000e+00> : vector<128x128xf32>
    %89 = tpu.matmul %86, %88, %cst_45 {dimension_numbers = #tpu.dot_dimension_numbers<[1], [0], [0], [1], [0, 0, 1, 1], [], []>} : vector<128x128xbf16>, vector<128x128xbf16>, vector<128x128xf32> -> vector<128x128xf32>
    %90 = arith.addf %85, %89 : vector<128x128xf32>
    %91 = vector.extract_strided_slice %74 {offsets = [16, 0], sizes = [128, 128], strides = [1, 1]} : vector<160x128xbf16> to vector<128x128xbf16>
    %c1_46 = arith.constant 1 : index
    %c0_47 = arith.constant 0 : index
    %c0_48 = arith.constant 0 : index
    %c0_49 = arith.constant 0 : index
    %92 = vector.load %arg9[%c1_46, %c0_47, %c0_48, %c0_49] : memref<3x3x128x128xbf16, #tpu.memory_space<vmem>>, vector<1x1x128x128xbf16>
    %93 = vector.shape_cast %92 : vector<1x1x128x128xbf16> to vector<128x128xbf16>
    %cst_50 = arith.constant dense<0.000000e+00> : vector<128x128xf32>
    %94 = tpu.matmul %91, %93, %cst_50 {dimension_numbers = #tpu.dot_dimension_numbers<[1], [0], [0], [1], [0, 0, 1, 1], [], []>} : vector<128x128xbf16>, vector<128x128xbf16>, vector<128x128xf32> -> vector<128x128xf32>
    %95 = arith.addf %90, %94 : vector<128x128xf32>
    %96 = vector.extract_strided_slice %75 {offsets = [16, 0], sizes = [128, 128], strides = [1, 1]} : vector<160x128xbf16> to vector<128x128xbf16>
    %c1_51 = arith.constant 1 : index
    %c1_52 = arith.constant 1 : index
    %c0_53 = arith.constant 0 : index
    %c0_54 = arith.constant 0 : index
    %97 = vector.load %arg9[%c1_51, %c1_52, %c0_53, %c0_54] : memref<3x3x128x128xbf16, #tpu.memory_space<vmem>>, vector<1x1x128x128xbf16>
    %98 = vector.shape_cast %97 : vector<1x1x128x128xbf16> to vector<128x128xbf16>
    %cst_55 = arith.constant dense<0.000000e+00> : vector<128x128xf32>
    %99 = tpu.matmul %96, %98, %cst_55 {dimension_numbers = #tpu.dot_dimension_numbers<[1], [0], [0], [1], [0, 0, 1, 1], [], []>} : vector<128x128xbf16>, vector<128x128xbf16>, vector<128x128xf32> -> vector<128x128xf32>
    %100 = arith.addf %95, %99 : vector<128x128xf32>
    %101 = vector.extract_strided_slice %76 {offsets = [16, 0], sizes = [128, 128], strides = [1, 1]} : vector<160x128xbf16> to vector<128x128xbf16>
    %c1_56 = arith.constant 1 : index
    %c2_57 = arith.constant 2 : index
    %c0_58 = arith.constant 0 : index
    %c0_59 = arith.constant 0 : index
    %102 = vector.load %arg9[%c1_56, %c2_57, %c0_58, %c0_59] : memref<3x3x128x128xbf16, #tpu.memory_space<vmem>>, vector<1x1x128x128xbf16>
    %103 = vector.shape_cast %102 : vector<1x1x128x128xbf16> to vector<128x128xbf16>
    %cst_60 = arith.constant dense<0.000000e+00> : vector<128x128xf32>
    %104 = tpu.matmul %101, %103, %cst_60 {dimension_numbers = #tpu.dot_dimension_numbers<[1], [0], [0], [1], [0, 0, 1, 1], [], []>} : vector<128x128xbf16>, vector<128x128xbf16>, vector<128x128xf32> -> vector<128x128xf32>
    %105 = arith.addf %100, %104 : vector<128x128xf32>
    %106 = vector.extract_strided_slice %74 {offsets = [32, 0], sizes = [128, 128], strides = [1, 1]} : vector<160x128xbf16> to vector<128x128xbf16>
    %c2_61 = arith.constant 2 : index
    %c0_62 = arith.constant 0 : index
    %c0_63 = arith.constant 0 : index
    %c0_64 = arith.constant 0 : index
    %107 = vector.load %arg9[%c2_61, %c0_62, %c0_63, %c0_64] : memref<3x3x128x128xbf16, #tpu.memory_space<vmem>>, vector<1x1x128x128xbf16>
    %108 = vector.shape_cast %107 : vector<1x1x128x128xbf16> to vector<128x128xbf16>
    %cst_65 = arith.constant dense<0.000000e+00> : vector<128x128xf32>
    %109 = tpu.matmul %106, %108, %cst_65 {dimension_numbers = #tpu.dot_dimension_numbers<[1], [0], [0], [1], [0, 0, 1, 1], [], []>} : vector<128x128xbf16>, vector<128x128xbf16>, vector<128x128xf32> -> vector<128x128xf32>
    %110 = arith.addf %105, %109 : vector<128x128xf32>
    %111 = vector.extract_strided_slice %75 {offsets = [32, 0], sizes = [128, 128], strides = [1, 1]} : vector<160x128xbf16> to vector<128x128xbf16>
    %c2_66 = arith.constant 2 : index
    %c1_67 = arith.constant 1 : index
    %c0_68 = arith.constant 0 : index
    %c0_69 = arith.constant 0 : index
    %112 = vector.load %arg9[%c2_66, %c1_67, %c0_68, %c0_69] : memref<3x3x128x128xbf16, #tpu.memory_space<vmem>>, vector<1x1x128x128xbf16>
    %113 = vector.shape_cast %112 : vector<1x1x128x128xbf16> to vector<128x128xbf16>
    %cst_70 = arith.constant dense<0.000000e+00> : vector<128x128xf32>
    %114 = tpu.matmul %111, %113, %cst_70 {dimension_numbers = #tpu.dot_dimension_numbers<[1], [0], [0], [1], [0, 0, 1, 1], [], []>} : vector<128x128xbf16>, vector<128x128xbf16>, vector<128x128xf32> -> vector<128x128xf32>
    %115 = arith.addf %110, %114 : vector<128x128xf32>
    %116 = vector.extract_strided_slice %76 {offsets = [32, 0], sizes = [128, 128], strides = [1, 1]} : vector<160x128xbf16> to vector<128x128xbf16>
    %c2_71 = arith.constant 2 : index
    %c2_72 = arith.constant 2 : index
    %c0_73 = arith.constant 0 : index
    %c0_74 = arith.constant 0 : index
    %117 = vector.load %arg9[%c2_71, %c2_72, %c0_73, %c0_74] : memref<3x3x128x128xbf16, #tpu.memory_space<vmem>>, vector<1x1x128x128xbf16>
    %118 = vector.shape_cast %117 : vector<1x1x128x128xbf16> to vector<128x128xbf16>
    %cst_75 = arith.constant dense<0.000000e+00> : vector<128x128xf32>
    %119 = tpu.matmul %116, %118, %cst_75 {dimension_numbers = #tpu.dot_dimension_numbers<[1], [0], [0], [1], [0, 0, 1, 1], [], []>} : vector<128x128xbf16>, vector<128x128xbf16>, vector<128x128xf32> -> vector<128x128xf32>
    %120 = arith.addf %115, %119 : vector<128x128xf32>
    %c0_76 = arith.constant 0 : index
    %c0_77 = arith.constant 0 : index
    %121 = vector.load %arg10[%c0_76, %c0_77] : memref<1x128xf32, #tpu.memory_space<vmem>>, vector<1x128xf32>
    %122 = vector.broadcast %121 : vector<1x128xf32> to vector<128x128xf32>
    %123 = arith.addf %120, %122 : vector<128x128xf32>
    %cst_78 = arith.constant 0.000000e+00 : f32
    %124 = vector.broadcast %cst_78 : f32 to vector<128x128xf32>
    %125 = arith.maximumf %123, %124 : vector<128x128xf32>
    %126 = arith.truncf %125 : vector<128x128xf32> to vector<128x128xbf16>
    %c0_79 = arith.constant 0 : index
    %c0_80 = arith.constant 0 : index
    %127 = vector.load %arg11[%c0_79, %c0_80] : memref<128x128xbf16, #tpu.memory_space<vmem>>, vector<128x128xbf16>
    %cst_81 = arith.constant dense<0.000000e+00> : vector<128x128xf32>
    %128 = tpu.matmul %126, %127, %cst_81 {dimension_numbers = #tpu.dot_dimension_numbers<[1], [0], [0], [1], [0, 0, 1, 1], [], []>} : vector<128x128xbf16>, vector<128x128xbf16>, vector<128x128xf32> -> vector<128x128xf32>
    %c0_82 = arith.constant 0 : index
    %c0_83 = arith.constant 0 : index
    %129 = vector.load %arg12[%c0_82, %c0_83] : memref<1x128xf32, #tpu.memory_space<vmem>>, vector<1x128xf32>
    %130 = vector.broadcast %129 : vector<1x128xf32> to vector<128x128xf32>
    %131 = arith.addf %128, %130 : vector<128x128xf32>
    %132 = arith.truncf %6 : vector<128x128xf32> to vector<128x128xbf16>
    %c0_84 = arith.constant 0 : index
    %c0_85 = arith.constant 0 : index
    %133 = vector.load %arg13[%c0_84, %c0_85] : memref<128x128xbf16, #tpu.memory_space<vmem>>, vector<128x128xbf16>
    %cst_86 = arith.constant dense<0.000000e+00> : vector<128x128xf32>
    %134 = tpu.matmul %132, %133, %cst_86 {dimension_numbers = #tpu.dot_dimension_numbers<[1], [0], [0], [1], [0, 0, 1, 1], [], []>} : vector<128x128xbf16>, vector<128x128xbf16>, vector<128x128xf32> -> vector<128x128xf32>
    %135 = arith.addf %131, %134 : vector<128x128xf32>
    %c0_87 = arith.constant 0 : index
    %c0_88 = arith.constant 0 : index
    %136 = vector.load %arg14[%c0_87, %c0_88] : memref<1x128xf32, #tpu.memory_space<vmem>>, vector<1x128xf32>
    %137 = vector.broadcast %136 : vector<1x128xf32> to vector<128x128xf32>
    %138 = arith.addf %135, %137 : vector<128x128xf32>
    %139 = vector.shape_cast %138 : vector<128x128xf32> to vector<8x16x128xf32>
    %c0_89 = arith.constant 0 : index
    %c0_90 = arith.constant 0 : index
    %c0_91 = arith.constant 0 : index
    %c0_92 = arith.constant 0 : index
    %140 = vector.load %arg15[%c0_89, %c0_90, %c0_91, %c0_92] : memref<1x8x16x128xf32, #tpu.memory_space<vmem>>, vector<1x8x16x128xf32>
    %141 = vector.shape_cast %140 : vector<1x8x16x128xf32> to vector<8x16x128xf32>
    %142 = vector.shape_cast %139 : vector<8x16x128xf32> to vector<1x8x16x128xf32>
    tpu.vector_store %arg15[%c0_89, %c0_90, %c0_91, %c0_92], %142 {strides = array<i32>} : memref<1x8x16x128xf32, #tpu.memory_space<vmem>>, vector<1x8x16x128xf32>,
    return
  }
  func.func @transform_0(%arg0: i32, %arg1: i32) -> (i32, i32, i32, i32) {
    %c0_i32 = arith.constant 0 : i32
    %c0_i32_0 = arith.constant 0 : i32
    %c0_i32_1 = arith.constant 0 : i32
    return %arg0, %arg1, %c0_i32, %c0_i32_0 : i32, i32, i32, i32
  }
  func.func @transform_1(%arg0: i32, %arg1: i32) -> (i32, i32, i32, i32) {
    %c8_i32 = arith.constant 8 : i32
    %0 = arith.muli %arg1, %c8_i32 : i32
    %c1_i32 = arith.constant 1 : i32
    %1 = arith.subi %0, %c1_i32 : i32
    %c0_i32 = arith.constant 0 : i32
    %2 = arith.maxsi %1, %c0_i32 : i32
    %c0_i32_0 = arith.constant 0 : i32
    %c0_i32_1 = arith.constant 0 : i32
    %c0_i32_2 = arith.constant 0 : i32
    return %arg0, %2, %c0_i32_0, %c0_i32_1 : i32, i32, i32, i32
  }
  func.func @transform_2(%arg0: i32, %arg1: i32) -> (i32, i32, i32, i32) {
    %c8_i32 = arith.constant 8 : i32
    %0 = arith.muli %arg1, %c8_i32 : i32
    %c8_i32_0 = arith.constant 8 : i32
    %1 = arith.addi %0, %c8_i32_0 : i32
    %c15_i32 = arith.constant 15 : i32
    %2 = arith.minsi %1, %c15_i32 : i32
    %c0_i32 = arith.constant 0 : i32
    %c0_i32_1 = arith.constant 0 : i32
    %c0_i32_2 = arith.constant 0 : i32
    return %arg0, %2, %c0_i32, %c0_i32_1 : i32, i32, i32, i32
  }
  func.func @transform_3(%arg0: i32, %arg1: i32) -> (i32, i32) {
    %c0_i32 = arith.constant 0 : i32
    %c0_i32_0 = arith.constant 0 : i32
    %c0_i32_1 = arith.constant 0 : i32
    return %c0_i32, %c0_i32_0 : i32, i32
  }
  func.func @transform_4(%arg0: i32, %arg1: i32) -> (i32, i32) {
    %c0_i32 = arith.constant 0 : i32
    %c0_i32_0 = arith.constant 0 : i32
    %c0_i32_1 = arith.constant 0 : i32
    return %c0_i32, %c0_i32_0 : i32, i32
  }
  func.func @transform_5(%arg0: i32, %arg1: i32) -> (i32, i32) {
    %c0_i32 = arith.constant 0 : i32
    %c0_i32_0 = arith.constant 0 : i32
    %c0_i32_1 = arith.constant 0 : i32
    return %c0_i32, %c0_i32_0 : i32, i32
  }
  func.func @transform_6(%arg0: i32, %arg1: i32) -> (i32, i32) {
    %c0_i32 = arith.constant 0 : i32
    %c0_i32_0 = arith.constant 0 : i32
    %c0_i32_1 = arith.constant 0 : i32
    return %c0_i32, %c0_i32_0 : i32, i32
  }
  func.func @transform_7(%arg0: i32, %arg1: i32) -> (i32, i32, i32, i32) {
    %c0_i32 = arith.constant 0 : i32
    %c0_i32_0 = arith.constant 0 : i32
    %c0_i32_1 = arith.constant 0 : i32
    %c0_i32_2 = arith.constant 0 : i32
    %c0_i32_3 = arith.constant 0 : i32
    return %c0_i32, %c0_i32_0, %c0_i32_1, %c0_i32_2 : i32, i32, i32, i32
  }
  func.func @transform_8(%arg0: i32, %arg1: i32) -> (i32, i32) {
    %c0_i32 = arith.constant 0 : i32
    %c0_i32_0 = arith.constant 0 : i32
    %c0_i32_1 = arith.constant 0 : i32
    return %c0_i32, %c0_i32_0 : i32, i32
  }
  func.func @transform_9(%arg0: i32, %arg1: i32) -> (i32, i32) {
    %c0_i32 = arith.constant 0 : i32
    %c0_i32_0 = arith.constant 0 : i32
    %c0_i32_1 = arith.constant 0 : i32
    return %c0_i32, %c0_i32_0 : i32, i32
  }
  func.func @transform_10(%arg0: i32, %arg1: i32) -> (i32, i32) {
    %c0_i32 = arith.constant 0 : i32
    %c0_i32_0 = arith.constant 0 : i32
    %c0_i32_1 = arith.constant 0 : i32
    return %c0_i32, %c0_i32_0 : i32, i32
  }
  func.func @transform_11(%arg0: i32, %arg1: i32) -> (i32, i32) {
    %c0_i32 = arith.constant 0 : i32
    %c0_i32_0 = arith.constant 0 : i32
    %c0_i32_1 = arith.constant 0 : i32
    return %c0_i32, %c0_i32_0 : i32, i32
  }
  func.func @transform_12(%arg0: i32, %arg1: i32) -> (i32, i32) {
    %c0_i32 = arith.constant 0 : i32
    %c0_i32_0 = arith.constant 0 : i32
    %c0_i32_1 = arith.constant 0 : i32
    return %c0_i32, %c0_i32_0 : i32, i32
  }
  func.func @transform_13(%arg0: i32, %arg1: i32) -> (i32, i32, i32, i32) {
    %c0_i32 = arith.constant 0 : i32
    %c0_i32_0 = arith.constant 0 : i32
    %c0_i32_1 = arith.constant 0 : i32
    return %arg0, %arg1, %c0_i32, %c0_i32_0 : i32, i32, i32, i32
  }
}

</mosaic_0001>

<bundles_post_ra>
// kernel: tpu_custom_call.1
= control target key start
LH: loop header
LB: loop body
LE: loop exit
PB: predicated region body
PF: predicated region fallthrough
CT: control target
= control target key end

     0   :  { %s5245_s0 = inlined_call_operand.hbm [shape: f32[2,16,16,128], index: 0, kind: input, shape index: {}]   ;;  %s5246_s1 = inlined_call_operand.hbm [shape: f32[2,16,16,128], index: 1, kind: input, shape index: {}]   ;;  %s5247_s2 = inlined_call_operand.hbm [shape: f32[2,16,16,128], index: 2, kind: input, shape index: {}]   ;;  %s5248_s3 = inlined_call_operand.vmem [shape: f32[1,128], index: 3, kind: input, shape index: {}]   ;;  %s5249_s4 = inlined_call_operand.vmem [shape: f32[1,128], index: 4, kind: input, shape index: {}]   ;;  %s5250_s5 = inlined_call_operand.hbm [shape: bf16[128,128], index: 5, kind: input, shape index: {}]   ;;  %s5251_s6 = inlined_call_operand.vmem [shape: f32[1,128], index: 6, kind: input, shape index: {}]   ;;  %s5252_s7 = inlined_call_operand.hbm [shape: bf16[3,3,128,128], index: 7, kind: input, shape index: {}]   ;;  %s5253_s8 = inlined_call_operand.vmem [shape: f32[1,128], index: 8, kind: input, shape index: {}]   ;;  %s5254_s9 = inlined_call_operand.hbm [shape: bf16[128,128], index: 9, kind: input, shape index: {}]   ;;  %s5255_s10 = inlined_call_operand.vmem [shape: f32[1,128], index: 10, kind: input, shape index: {}]   ;;  %s5256_s11 = inlined_call_operand.hbm [shape: bf16[128,128], index: 11, kind: input, shape index: {}]   ;;  %s5257_s12 = inlined_call_operand.vmem [shape: f32[1,128], index: 12, kind: input, shape index: {}]   ;;  %s5258_s13 = inlined_call_operand.hbm [shape: f32[2,16,16,128], index: 13, kind: output, shape index: {}]  }
   0x1   :  { %5284 = sst [smem:[#allocation37_spill]] %s5245_s0 }
   0x2   :  { %5285 = sst [smem:[#allocation38_spill]] %s5246_s1 }
   0x3   :  { %5286 = sst [smem:[#allocation39_spill]] %s5247_s2 }
   0x4   :  { %5287 = sst [smem:[#allocation40_spill]] %s5248_s3 }
   0x5   :  { %5288 = sst [smem:[#allocation41_spill]] %s5249_s4 }
   0x6   :  { %5289 = sst [smem:[#allocation42_spill]] %s5250_s5 }
   0x7   :  { %5290 = sst [smem:[#allocation43_spill]] %s5251_s6 }
   0x8   :  { %5291 = sst [smem:[#allocation44_spill]] %s5252_s7 }
   0x9   :  { %5292 = sst [smem:[#allocation45_spill]] %s5253_s8 }
   0xa   :  { %5293 = sst [smem:[#allocation46_spill]] %s5254_s9 }
   0xb   :  { %5294 = sst [smem:[#allocation47_spill]] %s5255_s10 }
   0xc   :  { %5295 = sst [smem:[#allocation48_spill]] %s5256_s11 }
   0xd   :  { %5296 = sst [smem:[#allocation49_spill]] %s5257_s12 }
   0xe   :  { %5297 = sst [smem:[#allocation50_spill]] %s5258_s13 }
   0xf   :  { %18 = vsyncpa [#allocation3], 0 }
  0x10   :  { %20 = vsyncpa [#allocation3 + $0x1], 0 }
  0x11   :  { %21 = vsyncpa [#allocation6], 0 }
  0x12   :  { %23 = vsyncpa [#allocation6 + $0x1], 0 }
  0x13   :  { %24 = vsyncpa [#allocation9], 0 }
  0x14   :  { %25 = vsyncpa [#allocation12], 0 }
  0x15   :  { %26 = vsyncpa [#allocation4], 0 }
  0x16   :  { %28 = vsyncpa [#allocation4 + $0x1], 0  ;;  %s4252_s25 = smov 0   ;;  %s4254_s26 = smov 0  }
  0x17   :  { %s4256_s27 = smov 0   ;;  %s4258_s28 = smov 0  }
  0x18   :  { %s4260_s29 = smov 0   ;;  %s4262_s30 = smov 0  }
  0x19   :  { %s4264_s14 = smov 0   ;;  %s4266_s15 = smov 0  }
  0x1a   :  { %s4268_s16 = smov 0   ;;  %s4270_s17 = smov 0  }
  0x1b   :  { %s4272_s18 = smov 0   ;;  %s4274_s19 = smov 0  }
  0x1c   :  { %s4276_s20 = smov 0   ;;  %s4278_s21 = smov 0  }
  0x1d LB: > { %5298 = sst [smem:[#allocation21_spill]] %s4117_s25  ;;  %s4323_s22 = sadd.s32 4294967295, %s4169_s21   ;;  %s4169_s21 = sphi %s4278_s21, %s34_s21   ;;  %s4165_s20 = sphi %s4276_s20, %s5367_s20   ;;  %s4161_s19 = sphi %s4274_s19, %s5366_s19   ;;  %s4157_s18 = sphi %s4272_s18, %s5375_s18   ;;  %s4153_s17 = sphi %s4270_s17, %s5364_s17   ;;  %s4149_s16 = sphi %s4268_s16, %s5374_s16   ;;  %s4145_s15 = sphi %s4266_s15, %s5373_s15   ;;  %s4141_s14 = sphi %s4264_s14, %s5372_s14   ;;  %s4137_s30 = sphi %s4262_s30, %s5371_s30   ;;  %s4133_s29 = sphi %s4260_s29, %s5370_s29   ;;  %s4129_s28 = sphi %s4258_s28, %s5369_s28   ;;  %s4125_s27 = sphi %s4256_s27, %s5368_s27   ;;  %s4121_s26 = sphi %s4254_s26, %s5359_s26   ;;  %s4117_s25 = sphi %s4252_s25, %s5358_s25  }
  0x1e   : > { %5299 = sst [smem:[#allocation22_spill]] %s4121_s26  ;;  %p3059_p0 = scmp.ge.s32.totalorder %s4169_s21, 1 }
  0x1f   : > { %5300 = sst [smem:[#allocation23_spill]] %s4125_s27  ;;  %p69_p1 = scmp.eq.s32.totalorder %s4323_s22, 0 }
  0x20   : > { %5301 = sst [smem:[#allocation24_spill]] %s4133_s29  ;;  %p389_p2 = scmp.lt.s32.totalorder %s4169_s21, 5 }
  0x21   : > { %5302 = sst [smem:[#allocation25_spill]] %s4149_s16  ;;  %s4171_s12 = smov [#allocation8]  }
  0x22   : > { %5303 = sst [smem:[#allocation26_spill]] %s4153_s17  ;;  %p4331_p3 = pnand %p3059_p0, %p389_p2 }
  0x23   : > { %5304 = sst [smem:[#allocation27_spill]] %s4157_s18  ;;  %s408_s10 = sshll.u32 %s4171_s12, 4  ;;  %s409_s10 = int_to_ptr.vmem [resolvable:$true] %s408_s10 }
  0x24   : > { %5305 = sst [smem:[#allocation28_spill]] %s4161_s19  ;;  %p3619_p4 = pneg %p4331_p3 }
  0x25   : > { %5306 = sst [smem:[#allocation29_spill]] %s4165_s20  ;;  %s5261_s6 = smov 64  }
  0x26   : > { %s5307_s5 = sld [smem:[#allocation42_spill]]  ;;  %p4339_p5 = pnand %p3619_p4, %p69_p1 }
  0x27   : > { %s5308_s18 = scalar_select %p4331_p3, 1, 0 }
  0x28   : > { %s5311_s9 = sld [smem:[#allocation46_spill]]  ;;  %s5263_s17 = smov 4  }
  0x29   : > { %5309 = sst [smem:[#allocation30_spill]] %s5308_s18  ;;  %s4174_s12 = smov [#allocation11]  }
  0x2a   : > { %s442_s4 = sshll.u32 %s4174_s12, 4  ;;  %s46_s24 = sadd.s32 1, %s4165_s20  ;;  %s443_s4 = int_to_ptr.vmem [resolvable:$true] %s442_s4 }
  0x2b   : > { %p63_p7 = scmp.eq.s32.totalorder %s4169_s21, 0  ;;  %s91_s3 = sadd.s32 1, %s4137_s30 }
  0x2c   : > { %s406_s13 = sshll.u32 %s5307_s5, 4  ;;  %s43_s5 = sadd.s32 1, %s4161_s19  ;;  %s407_s13 = int_to_ptr.hbm [resolvable:$true] %s406_s13 }
  0x2d   : > { %3622 = dma.hbm_to_vmem [thread:$0]  (!%p4339_p5), %s407_s13, 1024, %s409_s10, [#allocation9], %s5261_s6, %s5261_s6, %s5263_s17  }
  0x2e   : > { %s440_s8 = sshll.u32 %s5311_s9, 4  ;;  %p44_p6 = scmp.ge.s32.totalorder %s43_s5, 2  ;;  %s441_s8 = int_to_ptr.hbm [resolvable:$true] %s440_s8 }
  0x2f   : > { %3628 = dma.hbm_to_vmem [thread:$0]  (!%p4339_p5), %s441_s8, 1024, %s443_s4, [#allocation12], %s5261_s6, %s5261_s6, %s5263_s17  }
  0x30   : > { %s3053_s9 = sshll.u32 %s4161_s19, 3  ;;  %s5377_s5 = smov (%p44_p6, %s43_s5), 0 }
  0x31   : > { %5312 = sst [smem:[#allocation31_spill]] %s5377_s5  ;;  %s5379_s24 = smov (!%p44_p6, %s46_s24), %s4165_s20 }
  0x32   : > { %s51_s10 = ssub.s32 %s4161_s19, %s5377_s5  ;;  %s3054_s13 = sadd.s32 4294967295, %s3053_s9 }
  0x33   : > { %p48_p8 = scmp.ge.s32.totalorder %s5379_s24, 2  ;;  %p80_p9 = scmp.gt.s32.totalorder %s3054_s13, 0 }
  0x34   : > { %s3055_s4 = sshll.u32 %s5377_s5, 3  ;;  %p98_p10 = scmp.ne.s32.totalorder %s4137_s30, %s4133_s29 }
  0x35   : > { %s5381_s24 = smov (%p48_p8, %s5379_s24), 0  ;;  %s5383_s13 = smov (!%p80_p9, %s3054_s13), 0 }
  0x36   : > { %5313 = sst [smem:[#allocation32_spill]] %s5381_s24  ;;  %s4373_s8 = ssub.s32 %s4165_s20, %s5381_s24 }
  0x37   : > { %5314 = sst [smem:[#allocation33_spill]] %s4373_s8  ;;  %s3056_s12 = sadd.s32 4294967295, %s3055_s4 }
  0x38   : > { %s4376_s6 = sor.u32 %s51_s10, %s4373_s8  ;;  %p84_p11 = scmp.gt.s32.totalorder %s3056_s12, 0 }
  0x39   : > { %p53_p12 = scmp.eq.s32.totalorder %s4376_s6, 0  ;;  %p4381_p13 = por %p98_p10, %p63_p7 }
  0x3a   : > { %s5385_s12 = smov (!%p84_p11, %s3056_s12), 0  ;;  %p104_p0 = scmp.ne.s32.totalorder %s4133_s29, %s4129_s28 }
  0x3b   : > { %s4387_s24 = sadd.s32 8, %s3053_s9  ;;  %s87_s5 = ssub.s32 %s5383_s13, %s5385_s12 }
  0x3c   : > { %p116_p2 = scmp.lt.s32.totalorder %s4387_s24, 15  ;;  %s88_s10 = sor.u32 %s87_s5, %s4373_s8 }
  0x3d   : > { %p4393_p4 = por %p104_p0, %p69_p1  ;;  %p89_p6 = scmp.eq.s32.totalorder %s88_s10, 0 }
  0x3e   : > { %s4397_s2 = sadd.s32 8, %s3055_s4  ;;  %p5283_p9 = scmp.lt.s32.totalorder %s4169_s21, 4 }
  0x3f   : > { %s5316_s18 = scalar_select %p4393_p4, 1, 0 }
  0x40   : > { %5318 = sst [smem:[#allocation35_spill]] %s4397_s2  ;;  %s4405_s9 = sshll.u32 %s4165_s20, 5 }
  0x41   : > { %5317 = sst [smem:[#allocation34_spill]] %s5316_s18  ;;  %s501_s12 = sand.u32 1, %s4169_s21  }
  0x42   : > { %s4402_s28 = scalar_select %p89_p6, %s4137_s30, %s91_s3  }
  0x43   : > { %s503_s5 = sand.u32 1, %s4137_s30   ;;  %s3073_s0 = sshll.u32 %s5383_s13, 1 }
  0x44   : > { %s3070_s29 = sshll.u32 %s503_s5, 4  ;;  %s514_s8 = sadd.s32 %s3073_s0, %s4405_s9 }
  0x45   : > { %s3075_s25 = sshll.u32 %s514_s8, 3  ;;  %s505_s18 = scalar_lea.vmem [#allocation5], %s3070_s29 }
  0x46   : > { %s519_s10 = sshll.u32 %s505_s18, 4  ;;  %s5319_s1 = sld [smem:[#allocation38_spill]]  ;;  %s520_s10 = int_to_ptr.vmem [resolvable:$true] %s519_s10 }
  0x47   : > { %p3636_p10 = pnand %p5283_p9, %p4381_p13  ;;  %s5320_s7 = sld [smem:[#allocation44_spill]] }
  0x48   : > { %s4420_s0 = scalar_lea.sflag [#allocation6], %s501_s12  ;;  %s5279_s26 = smov 8  }
  0x49   : > { %s5321_s11 = sld [smem:[#allocation48_spill]]  ;;  %s4177_s18 = smov [#allocation10]  }
  0x4a   : > { %s425_s20 = sshll.u32 %s4177_s18, 4  ;;  %s5322_s8 = smov 4   ;;  %s426_s20 = int_to_ptr.vmem [resolvable:$true] %s425_s20 }
  0x4b   : > { %s5323_s12 = smov 64   ;;  %s4178_s5 = smov [#allocation13]  }
  0x4c   : > { %s516_s27 = scalar_lea.hbm %s5319_s1, %s3075_s25  ;;  %s5277_s25 = smov 128  }
  0x4d   : > { %s517_s2 = sshll.u32 %s516_s27, 4  ;;  %s423_s13 = sshll.u32 %s5320_s7, 4  ;;  %s518_s2 = int_to_ptr.hbm [resolvable:$true] %s517_s2  ;;  %s424_s13 = int_to_ptr.hbm [resolvable:$true] %s423_s13 }
  0x4e   : > { %3638 = dma.hbm_to_vmem [thread:$0]  (!%p3636_p10), %s518_s2, 256, %s520_s10, %s4420_s0, %s5277_s25, %s5277_s25, %s5279_s26  }
  0x4f   : > { %s457_s17 = sshll.u32 %s5321_s11, 4  ;;  %s459_s2 = sshll.u32 %s4178_s5, 4  ;;  %s458_s17 = int_to_ptr.hbm [resolvable:$true] %s457_s17  ;;  %s460_s2 = int_to_ptr.vmem [resolvable:$true] %s459_s2 }
  0x50   : > { %3625 = dma.hbm_to_vmem [thread:$0]  (!%p4339_p5), %s424_s13, 9216, %s426_s20, [#allocation9], %s5323_s12, %s5323_s12, %s5322_s8  }
  0x51   : > { %3631 = dma.hbm_to_vmem [thread:$0]  (!%p4339_p5), %s458_s17, 1024, %s460_s2, [#allocation12], %s5323_s12, %s5323_s12, %s5322_s8  }
  0x52   : > { %s3052_s10 = sadd.s32 4294967294, %s4169_s21   ;;  %s55_s4 = sadd.s32 1, %s4149_s16 }
  0x53   : > { %s4444_s3 = scalar_select %p53_p12, %s4149_s16, %s55_s4  }
  0x54   : > { %p62_p11 = scmp.ne.s32.totalorder %s4149_s16, %s4145_s15  ;;  %p68_p13 = scmp.ne.s32.totalorder %s4145_s15, %s4141_s14 }
  0x55   : > { %5324 = sst [smem:[#allocation36_spill]] %s4444_s3  ;;  %p376_p0 = scmp.eq.s32.totalorder %s4323_s22, 3 }
  0x56   : > { %p382_p6 = scmp.eq.s32.totalorder %s3052_s10, 3  ;;  %p4453_p10 = por %p63_p7, %p62_p11 }
  0x57   : > { %p4459_p8 = por %p69_p1, %p68_p13  ;;  %p4463_p5 = por %p376_p0, %p62_p11 }
  0x58   : > { %p4467_p12 = por %p382_p6, %p68_p13  ;;  %s5329_s29 = sld [smem:[#allocation35_spill]] }
  0x59   : > { %s476_s17 = sand.u32 1, %s4149_s16   ;;  %s5330_s18 = sld [smem:[#allocation23_spill]] }
  0x5a   : > { %s3481_s20 = sshll.u32 %s4161_s19, 4  ;;  %s5331_s8 = sld [smem:[#allocation22_spill]] }
  0x5b   : > { %s3065_s12 = sshll.u32 %s476_s17, 7  ;;  %s486_s5 = sadd.s32 %s3481_s20, %s4405_s9 }
  0x5c   : > { %s5332_s2 = sld [smem:[#allocation21_spill]]  ;;  %s3069_s10 = sshll.u32 %s486_s5, 3 }
  0x5d   : > { %s5333_s4 = sld [smem:[#allocation33_spill]]  ;;  %s480_s25 = scalar_lea.vmem [#allocation2], %s3065_s12 }
  0x5e   : > { %s491_s26 = sshll.u32 %s480_s25, 4  ;;  %s5334_s11 = sld [smem:[#allocation37_spill]]  ;;  %s492_s26 = int_to_ptr.vmem [resolvable:$true] %s491_s26 }
  0x5f   : > { %p3633_p11 = pnand %p5283_p9, %p4453_p10  ;;  %s477_s20 = scalar_lea.sflag [#allocation3], %s476_s17 }
  0x60   : > { %s5335_s19 = smov 8   ;;  %s5336_s5 = smov 128  }
  0x61   : > { %s5387_s24 = smov (!%p116_p2, %s4387_s24), 15  ;;  %p5337_p13 = scmp.lt.s32.totalorder %s5329_s29, 15 }
  0x62   : > { %s127_s1 = sadd.s32 1, %s5330_s18  ;;  %p134_p0 = scmp.ne.s32.totalorder %s5330_s18, %s5331_s8 }
  0x63   : > { %s5389_s29 = smov (!%p5337_p13, %s5329_s29), 15  ;;  %p140_p6 = scmp.ne.s32.totalorder %s5331_s8, %s5332_s2 }
  0x64   : > { %s488_s3 = scalar_lea.hbm %s5334_s11, %s3069_s10  ;;  %s123_s7 = ssub.s32 %s5387_s24, %s5389_s29 }
  0x65   : > { %s489_s16 = sshll.u32 %s488_s3, 4  ;;  %s124_s11 = sor.u32 %s123_s7, %s5333_s4  ;;  %s490_s16 = int_to_ptr.hbm [resolvable:$true] %s489_s16 }
  0x66   : > { %3635 = dma.hbm_to_vmem [thread:$0]  (!%p3633_p11), %s490_s16, 2048, %s492_s26, %s477_s20, %s5336_s5, %s5336_s5, %s5335_s19  }
  0x67   : > { %p4498_p10 = por %p134_p0, %p63_p7  ;;  %p125_p9 = scmp.eq.s32.totalorder %s124_s11, 0 }
  0x68   : > { %p4504_p11 = por %p140_p6, %p69_p1  ;;  %s531_s26 = sand.u32 1, %s5330_s18  }
  0x69   : > { %s3078_s3 = sshll.u32 %s5387_s24, 1  ;;  %s5391_s18 = smov (!%p125_p9, %s5330_s18), %s127_s1 }
  0x6a   : > { %s3076_s13 = sshll.u32 %s531_s26, 4  ;;  %s542_s29 = sadd.s32 %s3078_s3, %s4405_s9 }
  0x6b   : > { %s3080_s17 = sshll.u32 %s542_s29, 3  ;;  %s5340_s2 = sld [smem:[#allocation39_spill]] }
  0x6c   : > { %s533_s4 = scalar_lea.vmem [#allocation7], %s3076_s13  ;;  %p5341_p7 = scmp.lt.s32.totalorder %s4169_s21, 4 }
  0x6d   : > { %s547_s20 = sshll.u32 %s533_s4, 4  ;;  %s4527_s9 = sand.u32 (!%p4331_p3), 1, %s4145_s15   ;;  %s548_s20 = int_to_ptr.vmem [resolvable:$true] %s547_s20 }
  0x6e   : > { %p3639_p2 = pnand %p5341_p7, %p4498_p10  ;;  %s3082_s1 = sshll.u32 (!%p4331_p3), %s4527_s9, 7 }
  0x6f   : > { %559 = sbr.rel (%p4331_p3) target bundleno = 978 (0x3d2), region = 72  ;;  %s562_s11 = scalar_lea.sflag (!%p4331_p3), [#allocation3], %s4527_s9 }
  0x70   : > { %s4533_s25 = scalar_lea.vmem (!%p4331_p3), [#allocation2], %s3082_s1 }
  0x71   : > { %s544_s10 = scalar_lea.hbm %s5340_s2, %s3080_s17 }
  0x72   : > { %s545_s7 = sshll.u32 %s544_s10, 4  ;;  %s546_s7 = int_to_ptr.hbm [resolvable:$true] %s545_s7 }
  0x73   : > { %3641 = dma.hbm_to_vmem [thread:$0]  (!%p3639_p2), %s546_s7, 256, %s548_s20, %s4420_s0, %s5336_s5, %s5336_s5, %s5335_s19  }
  0x74   : > { %4092 = dma.done.wait (%p4459_p8), %s562_s11, 2048  }
  0x75   : > { %4094 = vsyncadd (%p4459_p8), %s562_s11, 4294965248  ;;  %s5343_s19 = sld [smem:[#allocation24_spill]]  ;;  %s571_s5 = sand.u32 1, %s4323_s22  }
  0x76   : > { %s572_s13 = scalar_lea.sflag [#allocation6], %s571_s5 }
  0x7b   : > { %s573_s26 = sand.u32 1, %s5343_s19  }
  0x7c   : > { %s4541_s3 = sshll.u32 %s573_s26, 4 }
  0x7d   : > { %s575_s29 = scalar_lea.vmem [#allocation5], %s4541_s3 }
  0x7e   : > { %4096 = dma.done.wait (%p4393_p4), %s572_s13, 256  }
  0x7f   : > { %4098 = vsyncadd (%p4393_p4), %s572_s13, 4294967040  ;;  %s5345_s17 = sld [smem:[#allocation22_spill]] }
  0x85   : > { %s583_s8 = sand.u32 1, %s5345_s17  }
  0x86   : > { %s4549_s23 = sshll.u32 %s583_s8, 4 }
  0x87   : > { %s585_s12 = scalar_lea.vmem [#allocation7], %s4549_s23 }
  0x88   : > { %4100 = dma.done.wait (%p4504_p11), %s572_s13, 256  }
  0x89   : > { %4102 = vsyncadd (%p4504_p11), %s572_s13, 4294967040 }
  0x8a   : > { %4104 = dma.done.wait (%p69_p1), [#allocation9], 10240  }
  0x8b   : > { %4106 = vsyncadd (%p69_p1), [#allocation9], 4294957056 }
  0x8c   : > { %4108 = dma.done.wait (%p69_p1), [#allocation12], 2048  }
  0x8d   : > { %4110 = vsyncadd (%p69_p1), [#allocation12], 4294965248  ;;  %v3489_v0 = vld [vmem:[#allocation8 + $0x38] sm:$0xff]  ;;  %v3488_v1 = vld [vmem:[#allocation8 + $0x30] sm:$0xff]  ;;  %s5346_s2 = sld [smem:[#allocation40_spill]]  ;;  %vm974_vm1 = vcmask 1040384  }
  0x8e   : > { %817 = vmatpush.bf16.msra.mxu0 %v3489_v0  ;;  %891 = vmatpush.bf16.msra.mxu1 %v3489_v0  ;;  %v4565_v2 = vld [vmem:[%s4533_s25] sm:$0xff]  ;;  %v4568_v3 = vld [vmem:[%s4533_s25 + $0x8] sm:$0xff]  ;;  %v3485_v8 = vld [vmem:[#allocation8 + $0x18] sm:$0xff]  ;;  %s5347_s20 = sld [smem:[#allocation41_spill]]  ;;  %vm1062_vm4 = vcmask 1046528   ;;  %s5128_s22 = scalar_lea.vmem [#allocation14], %s3082_s1 }
  0x8f   : > { %916 = vmatpush.bf16.msra.mxu2 %v3489_v0  ;;  %v2682_v4 = vpack.c.bf16 %v4568_v3, %v4565_v2  ;;  %v3487_v5 = vld [vmem:[#allocation8 + $0x28] sm:$0xff]  ;;  %v3486_v6 = vld [vmem:[#allocation8 + $0x20] sm:$0xff]  ;;  %v3484_v16 = vld [vmem:[#allocation8 + $0x10] sm:$0xff]  ;;  %s5348_s7 = sld [smem:[#allocation26_spill]] }
  0x90   : > { %v882_v9 = vld [vmem:[%s575_s29] sm:$0xff]  ;;  %v883_v10 = vld [vmem:[%s575_s29 + $0x8] sm:$0xff]  ;;  %s5349_s0 = sld [smem:[#allocation43_spill]] }
  0x91   : > { %v3483_v21 = vld [vmem:[#allocation8 + $0x8] sm:$0xff]  ;;  %v3482_v26 = vld [vmem:[#allocation8] sm:$0xff]  ;;  %v690_v29 = vld [vmem:[%s4533_s25 + $0x10] sm:$0xff]  ;;  %s5352_s13 = sld [smem:[#allocation45_spill]] }
  0x92   : > { %818 = vmatpush.bf16.msra.mxu0 %v3488_v1  ;;  %892 = vmatpush.bf16.msra.mxu1 %v3488_v1  ;;  %v691_v30 = vld [vmem:[%s4533_s25 + $0x18] sm:$0xff]  ;;  %v692_v38 = vld [vmem:[%s4533_s25 + $0x20] sm:$0xff]  ;;  %v693_v39 = vld [vmem:[%s4533_s25 + $0x28] sm:$0xff]  ;;  %s5353_s17 = sld [smem:[#allocation47_spill]] }
  0x93   : > { %917 = vmatpush.bf16.msra.mxu2 %v3488_v1  ;;  %v4575_v7 = vld [vmem:[%s5346_s2] ss:$0 sm:$0xff]  ;;  %v694_v47 = vld [vmem:[%s4533_s25 + $0x30] sm:$0xff]  ;;  %v695_v48 = vld [vmem:[%s4533_s25 + $0x38] sm:$0xff]  ;;  %s5355_s1 = sld [smem:[#allocation27_spill]] }
  0x94   : > { %v707_v11 = vmul.f32 %v4575_v7, %v4565_v2  ;;  %v708_v12 = vmul.f32 %v4575_v7, %v4568_v3  ;;  %v4588_v13 = vld [vmem:[%s5347_s20] ss:$0 sm:$0xff]  ;;  %v884_v14 = vmul.f32 %v4575_v7, %v882_v9  ;;  %v885_v15 = vmul.f32 %v4575_v7, %v883_v10  ;;  %v697_v57 = vld [vmem:[%s4533_s25 + $0x48] sm:$0xff]  ;;  %v698_v1 = vld [vmem:[%s4533_s25 + $0x50] sm:$0xff]  ;;  %s5356_s11 = sld [smem:[#allocation50_spill]] }
  0x95   : > { %v709_v31 = vmul.f32 %v4575_v7, %v690_v29  ;;  %v710_v32 = vmul.f32 %v4575_v7, %v691_v30  ;;  %v711_v40 = vmul.f32 %v4575_v7, %v692_v38  ;;  %v712_v41 = vmul.f32 %v4575_v7, %v693_v39  ;;  %v696_v56 = vld [vmem:[%s4533_s25 + $0x40] sm:$0xff]  ;;  %v3520_v29 = vld [vmem:[#allocation10 + $0xf0] sm:$0xff]  ;;  %v3511_v38 = vld [vmem:[#allocation10 + $0xa8] sm:$0xff]  ;;  %p932_p1 = scmp.eq.s32.totalorder %s5348_s7, 0  ;;  %p938_p3 = scmp.eq.s32.totalorder %s5348_s7, 1 }
  0x96   : > { %819 = vmatpush.bf16.msra.mxu0 %v3487_v5  ;;  %893 = vmatpush.bf16.msra.mxu1 %v3487_v5  ;;  %v726_v17 = vadd.f32 %v4588_v13, %v707_v11  ;;  %v727_v18 = vadd.f32 %v4588_v13, %v708_v12  ;;  %v886_v19 = vadd.f32 %v4588_v13, %v884_v14  ;;  %v3519_v39 = vld [vmem:[#allocation10 + $0xe8] sm:$0xff]  ;;  %s3578_s16 = sshll.u32 %s5348_s7, 4  ;;  %s2871_s7 = sshll.u32 %s5128_s22, 4  ;;  %s2872_s7 = int_to_ptr.vmem [resolvable:$true] %s2871_s7 }
  0x97   : > { %918 = vmatpush.bf16.msra.mxu2 %v3487_v5  ;;  %v887_v20 = vadd.f32 %v4588_v13, %v885_v15  ;;  %v728_v33 = vadd.f32 %v4588_v13, %v709_v31  ;;  %v729_v34 = vadd.f32 %v4588_v13, %v710_v32  ;;  %v730_v42 = vadd.f32 %v4588_v13, %v711_v40  ;;  %v699_v5 = vld [vmem:[%s4533_s25 + $0x58] sm:$0xff]  ;;  %v700_v15 = vld [vmem:[%s4533_s25 + $0x60] sm:$0xff]  ;;  %v3503_v32 = vld [vmem:[#allocation10 + $0x68] sm:$0xff]  ;;  %s933_s24 = scalar_select %p932_p1, 1, 0 }
  0x98   : > { %v742_v22 = vmax.f32 %v726_v17, 0.0  ;;  %v743_v23 = vmax.f32 %v727_v18, 0.0  ;;  %v888_v24 = vmax.f32 %v886_v19, 0.0  ;;  %v731_v43 = vadd.f32 %v4588_v13, %v712_v41  ;;  %v4629_v17 = vld [vmem:[%s4533_s25 + $0x70] sm:$0xff]  ;;  %v4632_v18 = vld [vmem:[%s4533_s25 + $0x78] sm:$0xff] }
  0x99   : > { %v889_v25 = vmax.f32 %v887_v20, 0.0  ;;  %v744_v35 = vmax.f32 %v728_v33, 0.0  ;;  %v745_v36 = vmax.f32 %v729_v34, 0.0  ;;  %v746_v44 = vmax.f32 %v730_v42, 0.0  ;;  %v907_v40 = vld [vmem:[%s585_s12] sm:$0xff]  ;;  %v908_v41 = vld [vmem:[%s585_s12 + $0x8] sm:$0xff] }
  0x9a   : > { %820 = vmatpush.bf16.msra.mxu0 %v3486_v6  ;;  %894 = vmatpush.bf16.msra.mxu1 %v3486_v6  ;;  %v758_v27 = vpack.c.bf16 %v743_v23, %v742_v22  ;;  %v747_v45 = vmax.f32 %v731_v43, 0.0  ;;  %v713_v49 = vmul.f32 %v4575_v7, %v694_v47  ;;  %v714_v50 = vmul.f32 %v4575_v7, %v695_v48  ;;  %v3505_v22 = vld [vmem:[#allocation10 + $0x78] sm:$0xff]  ;;  %v3510_v48 = vld [vmem:[#allocation10 + $0xa0] sm:$0xff]  ;;  %s939_s5 = scalar_select %p938_p3, 1, 0 }
  0x9b   : > { %919 = vmatpush.bf16.msra.mxu2 %v3486_v6  ;;  %v890_v28 = vpack.c.bf16 %v889_v25, %v888_v24  ;;  %v759_v37 = vpack.c.bf16 %v745_v36, %v744_v35  ;;  %v715_v58 = vmul.f32 %v4575_v7, %v696_v56  ;;  %v716_v59 = vmul.f32 %v4575_v7, %v697_v57  ;;  %v3497_v23 = vld [vmem:[#allocation10 + $0x38] sm:$0xff]  ;;  %v3495_v35 = vld [vmem:[#allocation10 + $0x28] sm:$0xff]  ;;  %s5354_s12 = sld [smem:[#allocation49_spill]]  ;;  %s3477_s2 = sshll.u32 %s5355_s1, 5 }
  0x9c   : > { %v760_v46 = vpack.c.bf16 %v747_v45, %v746_v44  ;;  %v732_v51 = vadd.f32 %v4588_v13, %v713_v49  ;;  %v733_v52 = vadd.f32 %v4588_v13, %v714_v50  ;;  %v717_v6 = vmul.f32 %v4575_v7, %v698_v1  ;;  %v3513_v24 = vld [vmem:[#allocation10 + $0xb8] sm:$0xff]  ;;  %1333 = vmatpush.bf16.msra.mxu3 %v3505_v22  ;;  %v3494_v44 = vld [vmem:[#allocation10 + $0x20] sm:$0xff]  ;;  %v3516_v1 = vld [vmem:[#allocation10 + $0xd0] sm:$0xff]  ;;  %s2868_s10 = sadd.s32 %s3578_s16, %s3477_s2  ;;  %s4027_s29 = scalar_lea.hbm %s5356_s11, 512 }
  0x9d   : > { %v734_v60 = vadd.f32 %v4588_v13, %v715_v58  ;;  %v735_v61 = vadd.f32 %v4588_v13, %v716_v59  ;;  %v719_v19 = vmul.f32 %v4575_v7, %v700_v15  ;;  %v3521_v25 = vld [vmem:[#allocation10 + $0xf8] sm:$0xff]  ;;  %v909_v42 = vmul.f32 %v4575_v7, %v907_v40  ;;  %v3518_v49 = vld [vmem:[#allocation10 + $0xe0] sm:$0xff]  ;;  %s3478_s4 = sshll.u32 %s2868_s10, 3 }
  0x9e   : > { %821 = vmatpush.bf16.msra.mxu0 %v3485_v8  ;;  %895 = vmatpush.bf16.msra.mxu1 %v3485_v8  ;;  %v748_v53 = vmax.f32 %v732_v51, 0.0  ;;  %v749_v54 = vmax.f32 %v733_v52, 0.0  ;;  %v736_v9 = vadd.f32 %v4588_v13, %v717_v6  ;;  %v910_v43 = vmul.f32 %v4575_v7, %v908_v41  ;;  %v3501_v47 = vld [vmem:[#allocation10 + $0x58] sm:$0xff]  ;;  %v3498_v6 = vld [vmem:[#allocation10 + $0x40] sm:$0xff]  ;;  %s2870_s19 = scalar_lea.hbm %s5356_s11, %s3478_s4 }
  0x9f   : > { %920 = vmatpush.bf16.msra.mxu2 %v3485_v8  ;;  %v750_v62 = vmax.f32 %v734_v60, 0.0  ;;  %v751_v63 = vmax.f32 %v735_v61, 0.0  ;;  %v718_v8 = vmul.f32 %v4575_v7, %v699_v5  ;;  %v738_v30 = vadd.f32 %v4588_v13, %v719_v19  ;;  %v3509_v58 = vld [vmem:[#allocation10 + $0x98] sm:$0xff]  ;;  %v3492_v60 = vld [vmem:[#allocation10 + $0x10] sm:$0xff]  ;;  %v4658_v15 = vld [vmem:[%s5349_s0] ss:$0 sm:$0xff] }
  0xa0   : > { %v761_v55 = vpack.c.bf16 %v749_v54, %v748_v53  ;;  %v752_v11 = vmax.f32 %v736_v9, 0.0  ;;  %v721_v45 = vmul.f32 %v4575_v7, %v4629_v17  ;;  %v911_v50 = vadd.f32 %v4588_v13, %v909_v42  ;;  %v3493_v54 = vld [vmem:[#allocation10 + $0x18] sm:$0xff]  ;;  %v3515_v9 = vld [vmem:[#allocation10 + $0xc8] sm:$0xff]  ;;  %s2873_s0 = sshll.u32 %s2870_s19, 4  ;;  %s2874_s0 = int_to_ptr.hbm [resolvable:$true] %s2873_s0 }
  0xa1   : > { %v762_v0 = vpack.c.bf16 %v751_v63, %v750_v62  ;;  %v737_v10 = vadd.f32 %v4588_v13, %v718_v8  ;;  %v754_v33 = vmax.f32 %v738_v30, 0.0  ;;  %v912_v51 = vadd.f32 %v4588_v13, %v910_v43  ;;  %v3517_v59 = vld [vmem:[#allocation10 + $0xd8] sm:$0xff]  ;;  %v3499_v63 = vld [vmem:[#allocation10 + $0x48] sm:$0xff]  ;;  %s4021_s26 = sshra.s32 %s2874_s0, 4  ;;  %s4022_s26 = int_to_ptr.hbm [resolvable:$true] %s4021_s26 }
  0xa2   : > { %822 = vmatpush.bf16.msra.mxu0 %v3484_v16  ;;  %896 = vmatpush.bf16.msra.mxu1 %v3484_v16  ;;  %v913_v52 = vmax.f32 %v911_v50, 0.0  ;;  %v3507_v8 = vld [vmem:[#allocation10 + $0x88] sm:$0xff]  ;;  %v934_v19 = vstv %s933_s24  ;;  %s4023_s3 = scalar_lea.hbm %s4022_s26, 128  ;;  %p4028_p13 = scmp.lt.s32.totalorder %s4022_s26, %s5356_s11 }
  0xa3   : > { %921 = vmatpush.bf16.msra.mxu2 %v3484_v16  ;;  %v753_v12 = vmax.f32 %v737_v10, 0.0  ;;  %v701_v16 = vld [vmem:[%s4533_s25 + $0x68] sm:$0xff]  ;;  %v914_v53 = vmax.f32 %v912_v51, 0.0  ;;  %v3490_v10 = vld [vmem:[#allocation10] sm:$0xff]  ;;  %vm4662_vm0 = vcmp.eq.s32.totalorder %v934_v19, 1  ;;  %p4024_p4 = scmp.ne.s32.totalorder %s4022_s26, %s4023_s3  ;;  %p4029_p0 = scmp.lt.s32.totalorder %s4027_s29, %s4023_s3 }
  0xa4   : > { %v720_v20 = vmul.f32 %v4575_v7, %v701_v16  ;;  %v944_v16 = vlaneseq }
  0xa5   : > { %v763_v14 = vpack.c.bf16 %v753_v12, %v752_v11  ;;  %v915_v57 = vpack.c.bf16 %v914_v53, %v913_v52  ;;  %v3506_v11 = vld [vmem:[#allocation10 + $0x80] sm:$0xff]  ;;  %p4025_p8 = pnand %p4024_p4, %p4463_p5  ;;  %p4030_p6 = por %p4029_p0, %p4028_p13 }
  0xa6   : > { %823 = vmatpush.bf16.msra.mxu0 %v3483_v21  ;;  %897 = vmatpush.bf16.msra.mxu1 %v3483_v21  ;;  %v739_v31 = vadd.f32 %v4588_v13, %v720_v20  ;;  %v3514_v12 = vld [vmem:[#allocation10 + $0xc0] sm:$0xff] }
  0xa7   : > { %922 = vmatpush.bf16.msra.mxu2 %v3483_v21  ;;  %v2689_v21 = vpack.c.bf16 %v4632_v18, %v4629_v17  ;;  %p4026_p9 = pneg %p4025_p8 }
  0xa8   : > { %v755_v34 = vmax.f32 %v739_v31, 0.0  ;;  %v3528_v31 = vld [vmem:[#allocation10 + $0x130] sm:$0xff] }
  0xa9   : > { %p4031_p10 = pnand %p4030_p6, %p4026_p9 }
  0xaa   : > { %824 = vmatpush.bf16.msra.mxu0 %v3482_v26  ;;  %898 = vmatpush.bf16.msra.mxu1 %v3482_v26  ;;  %v764_v36 = vpack.c.bf16 %v755_v34, %v754_v33 }
  0xab   : > { %923 = vmatpush.bf16.msra.mxu2 %v3482_v26  ;;  %v3504_v26 = vld [vmem:[#allocation10 + $0x70] sm:$0xff] }
  0xac   : > { %1334 = vmatpush.bf16.msra.mxu3 %v3504_v26  ;;  %v4666_v26 = vshrl.u32 %v944_v16, 7 }
  0xad   : > { %825 = vmatmul.bf16.vlgmr.msra.gmra.mxu0 %v758_v27  ;;  %899 = vmatmul.bf16.vlgmr.msra.gmra.mxu1 %v890_v28  ;;  %v3496_v27 = vld [vmem:[#allocation10 + $0x30] sm:$0xff] }
  0xae   : > { %1478 = vmatpush.bf16.msrb.mxu1 %v3497_v23  ;;  %1776 = vmatpush.bf16.msrb.mxu0 %v3521_v25  ;;  %v3512_v28 = vld [vmem:[#allocation10 + $0xb0] sm:$0xff]  ;;  %vm947_vm2 = vcmp.eq.s32.totalorder %v4666_v26, 0  ;;  %v4680_v40 = vadd.s32 8, %v4666_v26 }
  0xaf   : > { %1640 = vmatpush.bf16.msrb.mxu2 %v3513_v24 }
  0xb0   : > { %1335 = vmatpush.bf16.msra.mxu3 %v3503_v32  ;;  %924 = vmatmul.bf16.vlgmr.msra.gmra.mxu2 %v915_v57  ;;  %vm1057_vm3 = vcmp.eq.s32.totalorder %v4680_v40, 15 }
  0xb2   : > { %1479 = vmatpush.bf16.msrb.mxu1 %v3496_v27  ;;  %1777 = vmatpush.bf16.msrb.mxu0 %v3520_v29 }
  0xb3   : > { %1641 = vmatpush.bf16.msrb.mxu2 %v3512_v28  ;;  %v4179_v28 = vmov 0.0  }
  0xb4   : > { %v975_v29 = vrot.slane %v4179_v28, 7 }
  0xb6   : > { %1480 = vmatpush.bf16.msrb.mxu1 %v3495_v35  ;;  %1778 = vmatpush.bf16.msrb.mxu0 %v3519_v39 }
  0xb7   : > { %1642 = vmatpush.bf16.msrb.mxu2 %v3511_v38 }
  0xba   : > { %1481 = vmatpush.bf16.msrb.mxu1 %v3494_v44  ;;  %1779 = vmatpush.bf16.msrb.mxu0 %v3518_v49 }
  0xbb   : > { %1643 = vmatpush.bf16.msrb.mxu2 %v3510_v48 }
  0xbd   : > { %830 = vmatmul.bf16.gmra.mxu0 %v759_v37  ;;  %v3502_v37 = vld [vmem:[#allocation10 + $0x60] sm:$0xff] }
  0xbe   : > { %1336 = vmatpush.bf16.msra.mxu3 %v3502_v37  ;;  %1482 = vmatpush.bf16.msrb.mxu1 %v3493_v54 }
  0xbf   : > { %1644 = vmatpush.bf16.msrb.mxu2 %v3509_v58  ;;  %1780 = vmatpush.bf16.msrb.mxu0 %v3517_v59 }
  0xc2   : > { %1337 = vmatpush.bf16.msra.mxu3 %v3501_v47  ;;  %1483 = vmatpush.bf16.msrb.mxu1 %v3492_v60 }
  0xc3   : > { %1781 = vmatpush.bf16.msrb.mxu0 %v3516_v1 }
  0xc7   : > { %1782 = vmatpush.bf16.msrb.mxu0 %v3515_v9 }
  0xcb   : > { %1783 = vmatpush.bf16.msrb.mxu0 %v3514_v12 }
  0xcd   : > { %835 = vmatmul.bf16.gmra.mxu0 %v760_v46  ;;  %v722_v46 = vmul.f32 %v4575_v7, %v4632_v18  ;;  %v3500_v7 = vld [vmem:[#allocation10 + $0x50] sm:$0xff] }
  0xce   : > { %1338 = vmatpush.bf16.msra.mxu3 %v3500_v7 }
  0xcf   : > { %v741_v56 = vadd.f32 %v4588_v13, %v722_v46 }
  0xd1   : > { %v757_v62 = vmax.f32 %v741_v56, 0.0 }
  0xd2   : > { %1339 = vmatpush.bf16.msra.mxu3 %v3499_v63 }
  0xd6   : > { %1340 = vmatpush.bf16.msra.mxu3 %v3498_v6 }
  0xdd   : > { %840 = vmatmul.bf16.gmra.mxu0 %v761_v55  ;;  %v740_v55 = vadd.f32 %v4588_v13, %v721_v45  ;;  %v3491_v13 = vld [vmem:[#allocation10 + $0x8] sm:$0xff] }
  0xde   : > { %1484 = vmatpush.bf16.msrb.mxu1 %v3491_v13 }
  0xdf   : > { %v756_v61 = vmax.f32 %v740_v55, 0.0 }
  0xe1   : > { %v765_v5 = vpack.c.bf16 %v757_v62, %v756_v61 }
  0xe2   : > { %1485 = vmatpush.bf16.msrb.mxu1 %v3490_v10 }
  0xed   : > { %845 = vmatmul.bf16.gmra.mxu0 %v762_v0  ;;  %v3508_v0 = vld [vmem:[#allocation10 + $0x90] sm:$0xff] }
  0xee   : > { %1645 = vmatpush.bf16.msrb.mxu2 %v3508_v0 }
  0xf2   : > { %1646 = vmatpush.bf16.msrb.mxu2 %v3507_v8 }
  0xf6   : > { %1647 = vmatpush.bf16.msrb.mxu2 %v3506_v11 }
  0xfd   : > { %850 = vmatmul.bf16.gmra.mxu0 %v763_v14  ;;  %v3529_v14 = vld [vmem:[#allocation10 + $0x138] sm:$0xff] }
  0xfe   : > { %1912 = vmatpush.bf16.msrb.mxu3 %v3529_v14 }
 0x102   : > { %1913 = vmatpush.bf16.msrb.mxu3 %v3528_v31 }
 0x10d   : > { %855 = vmatmul.bf16.gmra.mxu0 %v764_v36 }
 0x11d   : > { %860 = vmatmul.bf16.gmra.mxu0 %v765_v5 }
 0x12a   : > { %v826_v20 = vpop.f32.mrf.mxu0  ;;  %v900_v22 = vpop.f32.mrf.mxu1 }
 0x12b   : > { %v901_v23 = vadd.f32 %v4658_v15, %v900_v22  ;;  %v827_v24 = vadd.f32 %v4658_v15, %v826_v20  ;;  %v3527_v22 = vld [vmem:[#allocation10 + $0x128] sm:$0xff] }
 0x12c   : > { %1914 = vmatpush.bf16.msrb.mxu3 %v3527_v22 }
 0x12d   : > { %v905_v27 = vmax.f32 %v901_v23, 0.0  ;;  %v4671_v32 = vmax.f32 %v827_v24, 0.0 }
 0x12f   : > { %v936_v30 = vsel %vm4662_vm0, 0.0, %v905_v27  ;;  %v980_v41 = vrot.slane %v4671_v32, 7  ;;  %v1066_v46 = vrot.slane %v4671_v32, 1 }
 0x130   : > { %v976_v33 = vrot.slane %v936_v30, 7  ;;  %v1164_v44 = vpack.c.bf16 %v936_v30, %v936_v30  ;;  %v1063_v49 = vrot.slane %v936_v30, 1 }
 0x132   : > { %v828_v34 = vpop.f32.mrf.mxu0  ;;  %v902_v35 = vpop.f32.mrf.mxu1  ;;  %v977_v36 = vsel %vm974_vm1, %v975_v29, %v976_v33  ;;  %v1253_v53 = vunpack.c.l.b16 %v1164_v44 }
 0x133   : > { %v829_v37 = vadd.f32 %v4658_v15, %v828_v34  ;;  %v903_v38 = vadd.f32 %v4658_v15, %v902_v35  ;;  %v1036_v39 = vsel %vm947_vm2, 0.0, %v977_v36 }
 0x134   : > { %v1144_v45 = vpack.c.bf16 %v1036_v39, %v1036_v39 }
 0x135   : > { %v867_v42 = vmax.f32 %v829_v37, 0.0  ;;  %v906_v43 = vmax.f32 %v903_v38, 0.0 }
 0x136   : > { %v1398_v54 = vunpack.c.l.b16 %v1144_v45 }
 0x137   : > { %v982_v47 = vrot.slane %v867_v42, 7  ;;  %v937_v48 = vsel %vm4662_vm0, 0.0, %v906_v43  ;;  %v1068_v11 = vrot.slane %v867_v42, 1  ;;  %v1167_v34 = vpack.c.bf16 %v867_v42, %v867_v42 }
 0x138   : > { %v978_v50 = vrot.slane %v937_v48, 7  ;;  %v1064_v51 = vrot.slane %v937_v48, 1  ;;  %v1165_v52 = vpack.c.bf16 %v937_v48, %v937_v48 }
 0x139   : > { %v983_v55 = vsel %vm974_vm1, %v980_v41, %v982_v47  ;;  %v1069_v36 = vsel %vm1062_vm4, %v1066_v46, %v1068_v11  ;;  %v1256_v43 = vunpack.c.l.b16 %v1167_v34 }
 0x13a   : > { %v831_v56 = vpop.f32.mrf.mxu0  ;;  %v1254_v57 = vunpack.c.l.b16 %v1165_v52  ;;  %v979_v7 = vsel %vm974_vm1, %v976_v33, %v978_v50  ;;  %v1065_v58 = vsel %vm1062_vm4, %v1063_v49, %v1064_v51  ;;  %v1067_v59 = vsel %vm1062_vm4, %v1064_v51, %v1066_v46 }
 0x13b   : > { %v832_v60 = vadd.f32 %v4658_v15, %v831_v56  ;;  %v1145_v61 = vpack.c.bf16 %v979_v7, %v979_v7  ;;  %v1125_v62 = vsel %vm1057_vm3, 0.0, %v1067_v59  ;;  %v1184_v63 = vpack.c.bf16 %v1065_v58, %v1065_v58 }
 0x13c   : > { %v1269_v0 = vpack.c.b16 %v1254_v57, %v1253_v53  ;;  %v1185_v1 = vpack.c.bf16 %v1125_v62, %v1125_v62  ;;  %v981_v13 = vsel %vm974_vm1, %v978_v50, %v980_v41  ;;  %v1147_v5 = vpack.c.bf16 %v983_v55, %v983_v55  ;;  %v3526_v57 = vld [vmem:[#allocation10 + $0x120] sm:$0xff] }
 0x13d   : > { %v4695_v6 = vmax.f32 %v832_v60, 0.0  ;;  %v1399_v8 = vunpack.c.l.b16 %v1145_v61  ;;  %v1560_v9 = vunpack.c.l.b16 %v1184_v63  ;;  %v1038_v10 = vsel %vm947_vm2, 0.0, %v981_v13  ;;  %1915 = vmatpush.bf16.msrb.mxu3 %v3526_v57 }
 0x13e   : > { %1341 = vmatmul.bf16.vlgmr.msra.gmra.mxu3 %v1269_v0  ;;  %v1561_v12 = vunpack.c.l.b16 %v1185_v1  ;;  %v1146_v14 = vpack.c.bf16 %v1038_v10, %v1038_v10  ;;  %v1401_v16 = vunpack.c.l.b16 %v1147_v5  ;;  %v1166_v33 = vpack.c.bf16 %v4671_v32, %v4671_v32 }
 0x13f   : > { %v1070_v19 = vrot.slane %v4695_v6, 1  ;;  %v1414_v20 = vpack.c.b16 %v1399_v8, %v1398_v54  ;;  %v984_v25 = vrot.slane %v4695_v6, 7  ;;  %v1186_v44 = vpack.c.bf16 %v1069_v36, %v1069_v36 }
 0x140   : > { %v1576_v23 = vpack.c.b16 %v1561_v12, %v1560_v9  ;;  %v1400_v24 = vunpack.c.l.b16 %v1146_v14  ;;  %v1255_v41 = vunpack.c.l.b16 %v1166_v33  ;;  %v1168_v0 = vpack.c.bf16 %v4695_v6, %v4695_v6 }
 0x141   : > { %1486 = vmatmul.bf16.vlgmr.msrb.gmra.mxu1 %v1414_v20  ;;  %v1071_v30 = vsel %vm1062_vm4, %v1068_v11, %v1070_v19  ;;  %v985_v38 = vsel %vm974_vm1, %v982_v47, %v984_v25  ;;  %v1562_v51 = vunpack.c.l.b16 %v1186_v44 }
 0x142   : > { %v833_v27 = vpop.f32.mrf.mxu0  ;;  %1648 = vmatmul.bf16.vlgmr.msrb.gmra.mxu2 %v1576_v23  ;;  %v1415_v29 = vpack.c.b16 %v1401_v16, %v1400_v24  ;;  %v1127_v37 = vsel %vm1057_vm3, 0.0, %v1071_v30  ;;  %v1040_v49 = vsel %vm947_vm2, 0.0, %v985_v38  ;;  %v4713_v46 = vpack.c.b16 %v1256_v43, %v1255_v41 }
 0x143   : > { %v834_v31 = vadd.f32 %v4658_v15, %v833_v27  ;;  %v1187_v45 = vpack.c.bf16 %v1127_v37, %v1127_v37  ;;  %v1148_v53 = vpack.c.bf16 %v1040_v49, %v1040_v49  ;;  %v1257_v11 = vunpack.c.l.b16 %v1168_v0 }
 0x144   : > { %1784 = vmatmul.bf16.vlgmr.msrb.gmra.mxu0 %v1415_v29 }
 0x145   : > { %v869_v35 = vmax.f32 %v834_v31, 0.0  ;;  %v1563_v52 = vunpack.c.l.b16 %v1187_v45  ;;  %v1402_v58 = vunpack.c.l.b16 %v1148_v53 }
 0x147   : > { %v986_v39 = vrot.slane %v869_v35, 7  ;;  %v1072_v54 = vrot.slane %v869_v35, 1  ;;  %v4716_v7 = vpack.c.b16 %v1563_v52, %v1562_v51  ;;  %v1169_v1 = vpack.c.bf16 %v869_v35, %v869_v35  ;;  %v3525_v35 = vld [vmem:[#allocation10 + $0x118] sm:$0xff] }
 0x148   : > { %1916 = vmatpush.bf16.msrb.mxu3 %v3525_v35 }
 0x149   : > { %v987_v48 = vsel %vm974_vm1, %v984_v25, %v986_v39  ;;  %v1073_v5 = vsel %vm1062_vm4, %v1070_v19, %v1072_v54  ;;  %v1258_v12 = vunpack.c.l.b16 %v1169_v1 }
 0x14a   : > { %v836_v32 = vpop.f32.mrf.mxu0  ;;  %v1149_v42 = vpack.c.bf16 %v987_v48, %v987_v48  ;;  %v1188_v14 = vpack.c.bf16 %v1073_v5, %v1073_v5 }
 0x14b   : > { %v837_v50 = vadd.f32 %v4658_v15, %v836_v32  ;;  %v4734_v19 = vpack.c.b16 %v1258_v12, %v1257_v11 }
 0x14c   : > { %v1403_v55 = vunpack.c.l.b16 %v1149_v42  ;;  %v1564_v25 = vunpack.c.l.b16 %v1188_v14 }
 0x14d   : > { %v870_v47 = vmax.f32 %v837_v50, 0.0 }
 0x14e   : > { %1346 = vmatmul.bf16.gmra.mxu3 %v4713_v46  ;;  %v4719_v61 = vpack.c.b16 %v1403_v55, %v1402_v58 }
 0x14f   : > { %v1074_v56 = vrot.slane %v870_v47, 1  ;;  %v988_v59 = vrot.slane %v870_v47, 7  ;;  %v1170_v45 = vpack.c.bf16 %v870_v47, %v870_v47 }
 0x151   : > { %1491 = vmatmul.bf16.gmra.mxu1 %v1415_v29  ;;  %v1075_v62 = vsel %vm1062_vm4, %v1072_v54, %v1074_v56  ;;  %v989_v9 = vsel %vm974_vm1, %v986_v39, %v988_v59  ;;  %v1259_v52 = vunpack.c.l.b16 %v1170_v45 }
 0x152   : > { %v838_v60 = vpop.f32.mrf.mxu0  ;;  %1653 = vmatmul.bf16.gmra.mxu2 %v4716_v7  ;;  %v1129_v8 = vsel %vm1057_vm3, 0.0, %v1075_v62  ;;  %v1042_v6 = vsel %vm947_vm2, 0.0, %v989_v9  ;;  %v3524_v9 = vld [vmem:[#allocation10 + $0x110] sm:$0xff] }
 0x153   : > { %v839_v63 = vadd.f32 %v4658_v15, %v838_v60  ;;  %v1189_v16 = vpack.c.bf16 %v1129_v8, %v1129_v8  ;;  %v1150_v29 = vpack.c.bf16 %v1042_v6, %v1042_v6  ;;  %1917 = vmatpush.bf16.msrb.mxu3 %v3524_v9 }
 0x154   : > { %1789 = vmatmul.bf16.gmra.mxu0 %v4719_v61 }
 0x155   : > { %v871_v13 = vmax.f32 %v839_v63, 0.0  ;;  %v1565_v27 = vunpack.c.l.b16 %v1189_v16  ;;  %v1404_v37 = vunpack.c.l.b16 %v1150_v29 }
 0x157   : > { %v990_v10 = vrot.slane %v871_v13, 7  ;;  %v1076_v31 = vrot.slane %v871_v13, 1  ;;  %v4737_v36 = vpack.c.b16 %v1565_v27, %v1564_v25  ;;  %v1171_v48 = vpack.c.bf16 %v871_v13, %v871_v13 }
 0x159   : > { %v991_v20 = vsel %vm974_vm1, %v988_v59, %v990_v10  ;;  %v1077_v32 = vsel %vm1062_vm4, %v1074_v56, %v1076_v31  ;;  %v1260_v53 = vunpack.c.l.b16 %v1171_v48 }
 0x15a   : > { %v841_v22 = vpop.f32.mrf.mxu0  ;;  %v1151_v23 = vpack.c.bf16 %v991_v20, %v991_v20  ;;  %v1190_v54 = vpack.c.bf16 %v1077_v32, %v1077_v32 }
 0x15b   : > { %v842_v24 = vadd.f32 %v4658_v15, %v841_v22  ;;  %v4754_v56 = vpack.c.b16 %v1260_v53, %v1259_v52  ;;  %v3523_v53 = vld [vmem:[#allocation10 + $0x108] sm:$0xff] }
 0x15c   : > { %v1405_v33 = vunpack.c.l.b16 %v1151_v23  ;;  %v1566_v62 = vunpack.c.l.b16 %v1190_v54  ;;  %1918 = vmatpush.bf16.msrb.mxu3 %v3523_v53  ;;  %v3542_v53 = vld [vmem:[#allocation10 + $0x1a0] sm:$0xff] }
 0x15d   : > { %v872_v30 = vmax.f32 %v842_v24, 0.0 }
 0x15e   : > { %1351 = vmatmul.bf16.gmra.mxu3 %v4734_v19  ;;  %v4741_v41 = vpack.c.b16 %v1405_v33, %v1404_v37 }
 0x15f   : > { %v1078_v34 = vrot.slane %v872_v30, 1  ;;  %v992_v38 = vrot.slane %v872_v30, 7  ;;  %v1172_v22 = vpack.c.bf16 %v872_v30, %v872_v30 }
 0x161   : > { %1496 = vmatmul.bf16.gmra.mxu1 %v4719_v61  ;;  %v1079_v43 = vsel %vm1062_vm4, %v1076_v31, %v1078_v34  ;;  %v993_v50 = vsel %vm974_vm1, %v990_v10, %v992_v38  ;;  %v1261_v33 = vunpack.c.l.b16 %v1172_v22  ;;  %v3544_v22 = vld [vmem:[#allocation10 + $0x1b0] sm:$0xff] }
 0x162   : > { %v843_v39 = vpop.f32.mrf.mxu0  ;;  %1658 = vmatmul.bf16.gmra.mxu2 %v4737_v36  ;;  %v1131_v42 = vsel %vm1057_vm3, 0.0, %v1079_v43  ;;  %v1044_v47 = vsel %vm947_vm2, 0.0, %v993_v50 }
 0x163   : > { %v844_v44 = vadd.f32 %v4658_v15, %v843_v39  ;;  %v1191_v55 = vpack.c.bf16 %v1131_v42, %v1131_v42  ;;  %v1152_v0 = vpack.c.bf16 %v1044_v47, %v1044_v47 }
 0x164   : > { %1794 = vmatmul.bf16.gmra.mxu0 %v4741_v41 }
 0x165   : > { %v873_v49 = vmax.f32 %v844_v44, 0.0  ;;  %v1567_v63 = vunpack.c.l.b16 %v1191_v55  ;;  %v1406_v11 = vunpack.c.l.b16 %v1152_v0  ;;  %v3553_v0 = vld [vmem:[#allocation10 + $0x1f8] sm:$0xff] }
 0x166   : > { %2320 = vmatpush.bf16.msra.mxu0 %v3553_v0 }
 0x167   : > { %v994_v51 = vrot.slane %v873_v49, 7  ;;  %v1080_v13 = vrot.slane %v873_v49, 1  ;;  %v4760_v10 = vpack.c.b16 %v1567_v63, %v1566_v62  ;;  %v1173_v23 = vpack.c.bf16 %v873_v49, %v873_v49  ;;  %v3545_v63 = vld [vmem:[#allocation10 + $0x1b8] sm:$0xff] }
 0x168   : > { %2184 = vmatpush.bf16.msra.mxu2 %v3545_v63 }
 0x169   : > { %v995_v57 = vsel %vm974_vm1, %v992_v38, %v994_v51  ;;  %v1081_v25 = vsel %vm1062_vm4, %v1078_v34, %v1080_v13  ;;  %v1262_v35 = vunpack.c.l.b16 %v1173_v23 }
 0x16a   : > { %v846_v58 = vpop.f32.mrf.mxu0  ;;  %v1153_v59 = vpack.c.bf16 %v995_v57, %v995_v57  ;;  %v1192_v37 = vpack.c.bf16 %v1081_v25, %v1081_v25 }
 0x16b   : > { %v847_v60 = vadd.f32 %v4658_v15, %v846_v58  ;;  %v4778_v34 = vpack.c.b16 %v1262_v35, %v1261_v33  ;;  %v3543_v35 = vld [vmem:[#allocation10 + $0x1a8] sm:$0xff] }
 0x16c   : > { %v1407_v5 = vunpack.c.l.b16 %v1153_v59  ;;  %v1568_v48 = vunpack.c.l.b16 %v1192_v37  ;;  %2185 = vmatpush.bf16.msra.mxu2 %v3544_v22  ;;  %v3532_v22 = vld [vmem:[#allocation10 + $0x150] sm:$0xff] }
 0x16d   : > { %v4756_v1 = vmax.f32 %v847_v60, 0.0  ;;  %v3537_v60 = vld [vmem:[#allocation10 + $0x178] sm:$0xff] }
 0x16e   : > { %1356 = vmatmul.bf16.gmra.mxu3 %v4754_v56  ;;  %v4765_v16 = vpack.c.b16 %v1407_v5, %v1406_v11  ;;  %2048 = vmatpush.bf16.msra.mxu1 %v3537_v60 }
 0x16f   : > { %v1082_v8 = vrot.slane %v4756_v1, 1  ;;  %v996_v12 = vrot.slane %v4756_v1, 7 }
 0x170   : > { %2186 = vmatpush.bf16.msra.mxu2 %v3543_v35 }
 0x171   : > { %1501 = vmatmul.bf16.gmra.mxu1 %v4741_v41  ;;  %v1083_v20 = vsel %vm1062_vm4, %v1080_v13, %v1082_v8  ;;  %v997_v29 = vsel %vm974_vm1, %v994_v51, %v996_v12  ;;  %v1174_v13 = vpack.c.bf16 %v4756_v1, %v4756_v1  ;;  %v3552_v1 = vld [vmem:[#allocation10 + $0x1f0] sm:$0xff] }
 0x172   : > { %v848_v14 = vpop.f32.mrf.mxu0  ;;  %1663 = vmatmul.bf16.gmra.mxu2 %v4760_v10  ;;  %v1133_v27 = vsel %vm1057_vm3, 0.0, %v1083_v20  ;;  %v1046_v30 = vsel %vm947_vm2, 0.0, %v997_v29  ;;  %v3536_v20 = vld [vmem:[#allocation10 + $0x170] sm:$0xff]  ;;  %v3535_v29 = vld [vmem:[#allocation10 + $0x168] sm:$0xff]  ;;  %2321 = vmatpush.bf16.msra.mxu0 %v3552_v1 }
 0x173   : > { %v849_v6 = vadd.f32 %v4658_v15, %v848_v14  ;;  %v1193_v38 = vpack.c.bf16 %v1133_v27, %v1133_v27  ;;  %v1154_v32 = vpack.c.bf16 %v1046_v30, %v1046_v30  ;;  %v1263_v23 = vunpack.c.l.b16 %v1174_v13  ;;  %2049 = vmatpush.bf16.msra.mxu1 %v3536_v20  ;;  %v3533_v13 = vld [vmem:[#allocation10 + $0x158] sm:$0xff] }
 0x174   : > { %1799 = vmatmul.bf16.gmra.mxu0 %v4765_v16  ;;  %2187 = vmatpush.bf16.msra.mxu2 %v3542_v53 }
 0x175   : > { %v875_v24 = vmax.f32 %v849_v6, 0.0  ;;  %v1569_v49 = vunpack.c.l.b16 %v1193_v38  ;;  %v1408_v55 = vunpack.c.l.b16 %v1154_v32 }
 0x177   : > { %v998_v31 = vrot.slane %v875_v24, 7  ;;  %v1084_v50 = vrot.slane %v875_v24, 1  ;;  %v4784_v54 = vpack.c.b16 %v1569_v49, %v1568_v48  ;;  %v1175_v5 = vpack.c.bf16 %v875_v24, %v875_v24  ;;  %2050 = vmatpush.bf16.msra.mxu1 %v3535_v29  ;;  %v3548_v29 = vld [vmem:[#allocation10 + $0x1d0] sm:$0xff] }
 0x179   : > { %v999_v39 = vsel %vm974_vm1, %v996_v12, %v998_v31  ;;  %v1085_v11 = vsel %vm1062_vm4, %v1082_v8, %v1084_v50  ;;  %v1264_v25 = vunpack.c.l.b16 %v1175_v5 }
 0x17a   : > { %v851_v43 = vpop.f32.mrf.mxu0  ;;  %v1155_v44 = vpack.c.bf16 %v999_v39, %v999_v39  ;;  %v1194_v24 = vpack.c.bf16 %v1085_v11, %v1085_v11  ;;  %v3541_v11 = vld [vmem:[#allocation10 + $0x198] sm:$0xff] }
 0x17b   : > { %v852_v45 = vadd.f32 %v4658_v15, %v851_v43  ;;  %v4809_v30 = vpack.c.b16 %v1264_v25, %v1263_v23  ;;  %2188 = vmatpush.bf16.msra.mxu2 %v3541_v11 }
 0x17c   : > { %v1409_v51 = vunpack.c.l.b16 %v1155_v44  ;;  %v1570_v43 = vunpack.c.l.b16 %v1194_v24  ;;  %v3540_v24 = vld [vmem:[#allocation10 + $0x190] sm:$0xff] }
 0x17d   : > { %v4780_v42 = vmax.f32 %v852_v45, 0.0 }
 0x17e   : > { %1361 = vmatmul.bf16.gmra.mxu3 %v4778_v34  ;;  %v4789_v58 = vpack.c.b16 %v1409_v51, %v1408_v55  ;;  %v3534_v51 = vld [vmem:[#allocation10 + $0x160] sm:$0xff] }
 0x17f   : > { %v1086_v52 = vrot.slane %v4780_v42, 1  ;;  %v1000_v57 = vrot.slane %v4780_v42, 7  ;;  %2051 = vmatpush.bf16.msra.mxu1 %v3534_v51  ;;  %2189 = vmatpush.bf16.msra.mxu2 %v3540_v24 }
 0x181   : > { %1506 = vmatmul.bf16.gmra.mxu1 %v4765_v16  ;;  %v1087_v59 = vsel %vm1062_vm4, %v1084_v50, %v1086_v52  ;;  %v1001_v14 = vsel %vm974_vm1, %v998_v31, %v1000_v57  ;;  %v3551_v31 = vld [vmem:[#allocation10 + $0x1e8] sm:$0xff]  ;;  %v3522_v50 = vld [vmem:[#allocation10 + $0x100] sm:$0xff] }
 0x182   : > { %v853_v47 = vpop.f32.mrf.mxu0  ;;  %1668 = vmatmul.bf16.gmra.mxu2 %v4784_v54  ;;  %v1135_v12 = vsel %vm1057_vm3, 0.0, %v1087_v59  ;;  %v1048_v33 = vsel %vm947_vm2, 0.0, %v1001_v14  ;;  %2322 = vmatpush.bf16.msra.mxu0 %v3551_v31  ;;  %v1176_v14 = vpack.c.bf16 %v4780_v42, %v4780_v42 }
 0x183   : > { %v854_v62 = vadd.f32 %v4658_v15, %v853_v47  ;;  %v1195_v27 = vpack.c.bf16 %v1135_v12, %v1135_v12  ;;  %v1156_v45 = vpack.c.bf16 %v1048_v33, %v1048_v33  ;;  %1919 = vmatpush.bf16.msrb.mxu3 %v3522_v50  ;;  %v3549_v12 = vld [vmem:[#allocation10 + $0x1d8] sm:$0xff]  ;;  %2052 = vmatpush.bf16.msra.mxu1 %v3533_v13  ;;  %v3546_v13 = vld [vmem:[#allocation10 + $0x1c0] sm:$0xff] }
 0x184   : > { %1804 = vmatmul.bf16.gmra.mxu0 %v4789_v58  ;;  %v1265_v33 = vunpack.c.l.b16 %v1176_v14 }
 0x185   : > { %v4798_v9 = vmax.f32 %v854_v62, 0.0  ;;  %v1571_v44 = vunpack.c.l.b16 %v1195_v27  ;;  %v1410_v59 = vunpack.c.l.b16 %v1156_v45 }
 0x187   : > { %v1002_v6 = vrot.slane %v4798_v9, 7  ;;  %v1088_v49 = vrot.slane %v4798_v9, 1  ;;  %v4816_v47 = vpack.c.b16 %v1571_v44, %v1570_v43  ;;  %v1177_v20 = vpack.c.bf16 %v4798_v9, %v4798_v9  ;;  %2053 = vmatpush.bf16.msra.mxu1 %v3532_v22 }
 0x189   : > { %v1003_v8 = vsel %vm974_vm1, %v1000_v57, %v1002_v6  ;;  %v3550_v57 = vld [vmem:[#allocation10 + $0x1e0] sm:$0xff]  ;;  %v1089_v23 = vsel %vm1062_vm4, %v1086_v52, %v1088_v49  ;;  %v1266_v35 = vunpack.c.l.b16 %v1177_v20 }
 0x18a   : > { %v856_v37 = vpop.f32.mrf.mxu0  ;;  %v1157_v38 = vpack.c.bf16 %v1003_v8, %v1003_v8  ;;  %2323 = vmatpush.bf16.msra.mxu0 %v3550_v57  ;;  %v1196_v9 = vpack.c.bf16 %v1089_v23, %v1089_v23 }
 0x18b   : > { %v857_v39 = vadd.f32 %v4658_v15, %v856_v37  ;;  %v3531_v37 = vld [vmem:[#allocation10 + $0x148] sm:$0xff]  ;;  %v4842_v45 = vpack.c.b16 %v1266_v35, %v1265_v33 }
 0x18c   : > { %v1411_v32 = vunpack.c.l.b16 %v1157_v38  ;;  %v3539_v38 = vld [vmem:[#allocation10 + $0x188] sm:$0xff]  ;;  %2054 = vmatpush.bf16.msra.mxu1 %v3531_v37 }
 0x18d   : > { %v4811_v48 = vmax.f32 %v857_v39, 0.0  ;;  %2190 = vmatpush.bf16.msra.mxu2 %v3539_v38 }
 0x18e   : > { %1366 = vmatmul.bf16.gmra.mxu3 %v4809_v30  ;;  %v4821_v63 = vpack.c.b16 %v1411_v32, %v1410_v59  ;;  %2324 = vmatpush.bf16.msra.mxu0 %v3549_v12  ;;  %v3530_v59 = vld [vmem:[#allocation10 + $0x140] sm:$0xff] }
 0x18f   : > { %v1090_v55 = vrot.slane %v4811_v48, 1  ;;  %v1004_v60 = vrot.slane %v4811_v48, 7 }
 0x190   : > { %2055 = vmatpush.bf16.msra.mxu1 %v3530_v59 }
 0x191   : > { %1511 = vmatmul.bf16.gmra.mxu1 %v4789_v58  ;;  %v1091_v0 = vsel %vm1062_vm4, %v1088_v49, %v1090_v55  ;;  %v1005_v27 = vsel %vm974_vm1, %v1002_v6, %v1004_v60  ;;  %v3547_v6 = vld [vmem:[#allocation10 + $0x1c8] sm:$0xff]  ;;  %v1572_v49 = vunpack.c.l.b16 %v1196_v9 }
 0x192   : > { %v858_v62 = vpop.f32.mrf.mxu0  ;;  %1673 = vmatmul.bf16.gmra.mxu2 %v4816_v47  ;;  %v1137_v25 = vsel %vm1057_vm3, 0.0, %v1091_v0  ;;  %v1050_v52 = vsel %vm947_vm2, 0.0, %v1005_v27  ;;  %2325 = vmatpush.bf16.msra.mxu0 %v3548_v29  ;;  %v3538_v0 = vld [vmem:[#allocation10 + $0x180] sm:$0xff] }
 0x193   : > { %v859_v5 = vadd.f32 %v4658_v15, %v858_v62  ;;  %v1197_v31 = vpack.c.bf16 %v1137_v25, %v1137_v25  ;;  %v1158_v50 = vpack.c.bf16 %v1050_v52, %v1050_v52  ;;  %2191 = vmatpush.bf16.msra.mxu2 %v3538_v0  ;;  %v1178_v25 = vpack.c.bf16 %v4811_v48, %v4811_v48 }
 0x194   : > { %1809 = vmatmul.bf16.gmra.mxu0 %v4821_v63 }
 0x195   : > { %v879_v1 = vmax.f32 %v859_v5, 0.0  ;;  %v1573_v32 = vunpack.c.l.b16 %v1197_v31  ;;  %v1412_v11 = vunpack.c.l.b16 %v1158_v50  ;;  %v1267_v31 = vunpack.c.l.b16 %v1178_v25  ;;  %v4882_v50 = vpop.f32.mrf.mxu2 }
 0x196   : > { %2326 = vmatpush.bf16.msra.mxu0 %v3547_v6 }
 0x197   : > { %v1006_v8 = vrot.slane %v879_v1, 7  ;;  %v1092_v53 = vrot.slane %v879_v1, 1  ;;  %v4848_v5 = vpack.c.b16 %v1573_v32, %v1572_v49  ;;  %v1179_v24 = vpack.c.bf16 %v879_v1, %v879_v1 }
 0x199   : > { %v1007_v42 = vsel %vm974_vm1, %v1004_v60, %v1006_v8  ;;  %v3561_v60 = vld [vmem:[#allocation10 + $0x238] sm:$0xff]  ;;  %v1093_v29 = vsel %vm1062_vm4, %v1090_v55, %v1092_v53  ;;  %v1268_v37 = vunpack.c.l.b16 %v1179_v24 }
 0x19a   : > { %v861_v39 = vpop.f32.mrf.mxu0  ;;  %v1159_v43 = vpack.c.bf16 %v1007_v42, %v1007_v42  ;;  %2456 = vmatpush.bf16.msra.mxu3 %v3561_v60  ;;  %2327 = vmatpush.bf16.msra.mxu0 %v3546_v13  ;;  %v1198_v42 = vpack.c.bf16 %v1093_v29, %v1093_v29  ;;  %v3559_v60 = vld [vmem:[#allocation10 + $0x228] sm:$0xff] }
 0x19b   : > { %v862_v44 = vadd.f32 %v4658_v15, %v861_v39  ;;  %v4876_v55 = vpack.c.b16 %v1268_v37, %v1267_v31  ;;  %v3558_v31 = vld [vmem:[#allocation10 + $0x220] sm:$0xff] }
 0x19c   : > { %v1413_v57 = vunpack.c.l.b16 %v1159_v43  ;;  %v1574_v39 = vunpack.c.l.b16 %v1198_v42 }
 0x19d   : > { %v4844_v51 = vmax.f32 %v862_v44, 0.0  ;;  %v3560_v44 = vld [vmem:[#allocation10 + $0x230] sm:$0xff] }
 0x19e   : > { %1371 = vmatmul.bf16.gmra.mxu3 %v4842_v45  ;;  %v4853_v20 = vpack.c.b16 %v1413_v57, %v1412_v11  ;;  %v4888_v57 = vpop.f32.mrf.mxu2 }
 0x19f   : > { %v1094_v62 = vrot.slane %v4844_v51, 1  ;;  %v1008_v12 = vrot.slane %v4844_v51, 7  ;;  %2457 = vmatpush.bf16.msra.mxu3 %v3560_v44 }
 0x1a1   : > { %1516 = vmatmul.bf16.gmra.mxu1 %v4821_v63  ;;  %v1095_v22 = vsel %vm1062_vm4, %v1092_v53, %v1094_v62  ;;  %v1009_v35 = vsel %vm974_vm1, %v1006_v8, %v1008_v12 }
 0x1a2   : > { %v863_v14 = vpop.f32.mrf.mxu0  ;;  %1678 = vmatmul.bf16.gmra.mxu2 %v4848_v5  ;;  %v1139_v33 = vsel %vm1057_vm3, 0.0, %v1095_v22  ;;  %v1052_v48 = vsel %vm947_vm2, 0.0, %v1009_v35 }
 0x1a3   : > { %v864_v23 = vadd.f32 %v4658_v15, %v863_v14  ;;  %v1199_v52 = vpack.c.bf16 %v1139_v33, %v1139_v33  ;;  %v1160_v6 = vpack.c.bf16 %v1052_v48, %v1052_v48  ;;  %2458 = vmatpush.bf16.msra.mxu3 %v3559_v60 }
 0x1a4   : > { %1814 = vmatmul.bf16.gmra.mxu0 %v4853_v20 }
 0x1a5   : > { %v4862_v27 = vmax.f32 %v864_v23, 0.0  ;;  %v1575_v43 = vunpack.c.l.b16 %v1199_v52  ;;  %v1724_v32 = vunpack.c.l.b16 %v1160_v6 }
 0x1a7   : > { %v1010_v9 = vrot.slane %v4862_v27, 7  ;;  %v4879_v49 = vpack.c.b16 %v1575_v43, %v1574_v39  ;;  %2459 = vmatpush.bf16.msra.mxu3 %v3558_v31 }
 0x1a9   : > { %v1011_v1 = vsel %vm974_vm1, %v1008_v12, %v1010_v9 }
 0x1aa   : > { %v1161_v38 = vpack.c.bf16 %v1011_v1, %v1011_v1 }
 0x1ac   : > { %v1725_v8 = vunpack.c.l.b16 %v1161_v38 }
 0x1ae   : > { %1376 = vmatmul.bf16.gmra.mxu3 %v4876_v55  ;;  %v4885_v53 = vpack.c.b16 %v1725_v8, %v1724_v32  ;;  %v3557_v32 = vld [vmem:[#allocation10 + $0x218] sm:$0xff] }
 0x1af   : > { %2460 = vmatpush.bf16.msra.mxu3 %v3557_v32 }
 0x1b1   : > { %1521 = vmatmul.bf16.gmra.mxu1 %v4853_v20 }
 0x1b2   : > { %1683 = vmatmul.bf16.gmra.mxu2 %v4879_v49 }
 0x1b4   : > { %1819 = vmatmul.bf16.gmra.mxu0 %v4885_v53 }
 0x1be   : > { %v1487_v59 = vpop.f32.mrf.mxu1  ;;  %1920 = vmatmul.bf16.vlgmr.msrb.gmra.mxu3 %v4713_v46 }
 0x1c1   : > { %v1785_v0 = vpop.f32.mrf.mxu0  ;;  %v1342_v13 = vpop.f32.mrf.mxu3  ;;  %2056 = vmatmul.bf16.vlgmr.msra.gmra.mxu1 %v4716_v7 }
 0x1c2   : > { %v1488_v11 = vadd.f32 %v1487_v59, %v1342_v13  ;;  %2192 = vmatmul.bf16.vlgmr.msra.gmra.mxu2 %v4719_v61 }
 0x1c4   : > { %2328 = vmatmul.bf16.vlgmr.msra.gmra.mxu0 %v4734_v19 }
 0x1c5   : > { %v1649_v12 = vpop.f32.mrf.mxu2 }
 0x1c6   : > { %v1689_v14 = vadd.f32 %v1649_v12, %v1488_v11  ;;  %v1489_v22 = vpop.f32.mrf.mxu1 }
 0x1c8   : > { %v4894_v23 = vadd.f32 %v1785_v0, %v1689_v14 }
 0x1c9   : > { %v1787_v25 = vpop.f32.mrf.mxu0  ;;  %v1344_v24 = vpop.f32.mrf.mxu3 }
 0x1ca   : > { %v1490_v29 = vadd.f32 %v1489_v22, %v1344_v24 }
 0x1cd   : > { %v1651_v46 = vpop.f32.mrf.mxu2 }
 0x1ce   : > { %v1690_v33 = vadd.f32 %v1651_v46, %v1490_v29  ;;  %v1492_v35 = vpop.f32.mrf.mxu1  ;;  %1925 = vmatmul.bf16.gmra.mxu3 %v4734_v19 }
 0x1d0   : > { %v4897_v7 = vadd.f32 %v1787_v25, %v1690_v33  ;;  %v3556_v33 = vld [vmem:[#allocation10 + $0x210] sm:$0xff] }
 0x1d1   : > { %v1790_v61 = vpop.f32.mrf.mxu0  ;;  %v1347_v37 = vpop.f32.mrf.mxu3  ;;  %2061 = vmatmul.bf16.gmra.mxu1 %v4737_v36  ;;  %2461 = vmatpush.bf16.msra.mxu3 %v3556_v33  ;;  %v940_v33 = vstv %s939_s5  ;;  %s2856_s5 = scalar_lea.sflag [#allocation4], %s4527_s9 }
 0x1d2   : > { %v1493_v42 = vadd.f32 %v1492_v35, %v1347_v37  ;;  %2197 = vmatmul.bf16.gmra.mxu2 %v4741_v41  ;;  %vm941_vm5 = vcmp.eq.s32.totalorder %v940_v33, 1 }
 0x1d4   : > { %2333 = vmatmul.bf16.gmra.mxu0 %v4754_v56 }
 0x1d5   : > { %v1654_v52 = vpop.f32.mrf.mxu2 }
 0x1d6   : > { %v1691_v1 = vadd.f32 %v1654_v52, %v1493_v42  ;;  %v1494_v48 = vpop.f32.mrf.mxu1 }
 0x1d8   : > { %v4902_v38 = vadd.f32 %v1790_v61, %v1691_v1 }
 0x1d9   : > { %v1792_v39 = vpop.f32.mrf.mxu0  ;;  %v1349_v19 = vpop.f32.mrf.mxu3 }
 0x1da   : > { %v1495_v43 = vadd.f32 %v1494_v48, %v1349_v19 }
 0x1dd   : > { %v1656_v6 = vpop.f32.mrf.mxu2 }
 0x1de   : > { %v1692_v8 = vadd.f32 %v1656_v6, %v1495_v43  ;;  %v1497_v44 = vpop.f32.mrf.mxu1  ;;  %1930 = vmatmul.bf16.gmra.mxu3 %v4754_v56 }
 0x1e0   : > { %v4905_v59 = vadd.f32 %v1792_v39, %v1692_v8  ;;  %v3555_v8 = vld [vmem:[#allocation10 + $0x208] sm:$0xff] }
 0x1e1   : > { %v1795_v41 = vpop.f32.mrf.mxu0  ;;  %v1352_v60 = vpop.f32.mrf.mxu3  ;;  %2066 = vmatmul.bf16.gmra.mxu1 %v4760_v10  ;;  %2462 = vmatpush.bf16.msra.mxu3 %v3555_v8 }
 0x1e2   : > { %v1498_v0 = vadd.f32 %v1497_v44, %v1352_v60  ;;  %2202 = vmatmul.bf16.gmra.mxu2 %v4765_v16 }
 0x1e4   : > { %2338 = vmatmul.bf16.gmra.mxu0 %v4778_v34 }
 0x1e5   : > { %v1659_v13 = vpop.f32.mrf.mxu2 }
 0x1e6   : > { %v1693_v11 = vadd.f32 %v1659_v13, %v1498_v0  ;;  %v1499_v12 = vpop.f32.mrf.mxu1 }
 0x1e8   : > { %v4910_v14 = vadd.f32 %v1795_v41, %v1693_v11 }
 0x1e9   : > { %v1797_v22 = vpop.f32.mrf.mxu0  ;;  %v1354_v56 = vpop.f32.mrf.mxu3 }
 0x1ea   : > { %v1500_v25 = vadd.f32 %v1499_v12, %v1354_v56 }
 0x1ed   : > { %v1661_v24 = vpop.f32.mrf.mxu2 }
 0x1ee   : > { %v1694_v29 = vadd.f32 %v1661_v24, %v1500_v25  ;;  %v1502_v46 = vpop.f32.mrf.mxu1  ;;  %1935 = vmatmul.bf16.gmra.mxu3 %v4778_v34  ;;  %v3554_v25 = vld [vmem:[#allocation10 + $0x200] sm:$0xff] }
 0x1ef   : > { %2463 = vmatpush.bf16.msra.mxu3 %v3554_v25 }
 0x1f0   : > { %v4913_v35 = vadd.f32 %v1797_v22, %v1694_v29  ;;  %v926_v29 = vadd.f32 %v4658_v15, %v4882_v50  ;;  %v1181_v50 = vpack.c.bf16 %v4862_v27, %v4862_v27 }
 0x1f1   : > { %v1800_v16 = vpop.f32.mrf.mxu0  ;;  %v1357_v31 = vpop.f32.mrf.mxu3  ;;  %2071 = vmatmul.bf16.gmra.mxu1 %v4784_v54 }
 0x1f2   : > { %v1503_v61 = vadd.f32 %v1502_v46, %v1357_v31  ;;  %2207 = vmatmul.bf16.gmra.mxu2 %v4789_v58  ;;  %v930_v31 = vmax.f32 %v926_v29, 0.0 }
 0x1f4   : > { %2343 = vmatmul.bf16.gmra.mxu0 %v4809_v30 }
 0x1f5   : > { %v1664_v37 = vpop.f32.mrf.mxu2 }
 0x1f6   : > { %v1695_v42 = vadd.f32 %v1664_v37, %v1503_v61  ;;  %v1504_v52 = vpop.f32.mrf.mxu1 }
 0x1f8   : > { %v4918_v1 = vadd.f32 %v1800_v16, %v1695_v42  ;;  %v1180_v42 = vpack.c.bf16 %v4844_v51, %v4844_v51 }
 0x1f9   : > { %v1802_v48 = vpop.f32.mrf.mxu0  ;;  %v1359_v34 = vpop.f32.mrf.mxu3 }
 0x1fa   : > { %v1505_v39 = vadd.f32 %v1504_v52, %v1359_v34  ;;  %v4951_v34 = vsel %vm941_vm5, 0.0, %v930_v31 }
 0x1fd   : > { %v1666_v19 = vpop.f32.mrf.mxu2 }
 0x1fe   : > { %v1696_v43 = vadd.f32 %v1666_v19, %v1505_v39  ;;  %v1507_v6 = vpop.f32.mrf.mxu1  ;;  %1940 = vmatmul.bf16.gmra.mxu3 %v4809_v30 }
 0x200   : > { %v4921_v44 = vadd.f32 %v1802_v48, %v1696_v43  ;;  %v1860_v43 = vunpack.c.l.b16 %v1180_v42 }
 0x201   : > { %v1805_v58 = vpop.f32.mrf.mxu0  ;;  %v1362_v32 = vpop.f32.mrf.mxu3  ;;  %2076 = vmatmul.bf16.gmra.mxu1 %v4816_v47 }
 0x202   : > { %v1508_v41 = vadd.f32 %v1507_v6, %v1362_v32  ;;  %2212 = vmatmul.bf16.gmra.mxu2 %v4821_v63  ;;  %v1861_v6 = vunpack.c.l.b16 %v1181_v50 }
 0x204   : > { %2348 = vmatmul.bf16.gmra.mxu0 %v4842_v45 }
 0x205   : > { %v1669_v60 = vpop.f32.mrf.mxu2 }
 0x206   : > { %v1697_v0 = vadd.f32 %v1669_v60, %v1508_v41  ;;  %v4926_v13 = vpop.f32.mrf.mxu1 }
 0x208   : > { %v4928_v11 = vadd.f32 %v1805_v58, %v1697_v0  ;;  %v1012_v58 = vrot.slane %v4951_v34, 7  ;;  %v1862_v0 = vpack.c.b16 %v1861_v6, %v1860_v43 }
 0x209   : > { %v4930_v30 = vpop.f32.mrf.mxu0  ;;  %v4932_v12 = vpop.f32.mrf.mxu3 }
 0x20d   : > { %v4935_v22 = vpop.f32.mrf.mxu2 }
 0x20e   : > { %v1512_v56 = vpop.f32.mrf.mxu1  ;;  %1945 = vmatmul.bf16.gmra.mxu3 %v4842_v45  ;;  %v928_v45 = vadd.f32 %v4658_v15, %v4888_v57  ;;  %v1096_v15 = vrot.slane %v4862_v27, 1  ;;  %v1098_v57 = vrot.slane %v4951_v34, 1  ;;  %v1182_v27 = vpack.c.bf16 %v4951_v34, %v4951_v34 }
 0x210   : > { %v931_v39 = vmax.f32 %v928_v45, 0.0  ;;  %v1099_v29 = vsel %vm1062_vm4, %v1096_v15, %v1098_v57  ;;  %v1097_v33 = vsel %vm1062_vm4, %v1094_v62, %v1096_v15 }
 0x211   : > { %v1810_v63 = vpop.f32.mrf.mxu0  ;;  %v1367_v24 = vpop.f32.mrf.mxu3  ;;  %2081 = vmatmul.bf16.gmra.mxu1 %v4848_v5 }
 0x212   : > { %v1513_v46 = vadd.f32 %v1512_v56, %v1367_v24  ;;  %2217 = vmatmul.bf16.gmra.mxu2 %v4853_v20  ;;  %v4956_v32 = vsel %vm941_vm5, 0.0, %v931_v39  ;;  %v2268_v39 = vunpack.c.l.b16 %v1182_v27 }
 0x213   : > { %v1014_v25 = vrot.slane %v4956_v32, 7  ;;  %v1183_v62 = vpack.c.bf16 %v4956_v32, %v4956_v32 }
 0x214   : > { %2353 = vmatmul.bf16.gmra.mxu0 %v4876_v55 }
 0x215   : > { %v1674_v16 = vpop.f32.mrf.mxu2  ;;  %v1015_v45 = vsel %vm974_vm1, %v1012_v58, %v1014_v25 }
 0x216   : > { %v1699_v61 = vadd.f32 %v1674_v16, %v1513_v46  ;;  %v1514_v37 = vpop.f32.mrf.mxu1  ;;  %v1141_v16 = vsel %vm1057_vm3, 0.0, %v1099_v29  ;;  %v1163_v51 = vpack.c.bf16 %v1015_v45, %v1015_v45 }
 0x217   : > { %v1201_v42 = vpack.c.bf16 %v1141_v16, %v1141_v16 }
 0x218   : > { %v4949_v52 = vadd.f32 %v1810_v63, %v1699_v61 }
 0x219   : > { %v1812_v20 = vpop.f32.mrf.mxu0  ;;  %v1369_v48 = vpop.f32.mrf.mxu3  ;;  %v1997_v26 = vunpack.c.l.b16 %v1201_v42  ;;  %v3577_v42 = vld [vmem:[#allocation13 + $0x38] sm:$0xff] }
 0x21a   : > { %v1515_v19 = vadd.f32 %v1514_v37, %v1369_v48  ;;  %2754 = vmatpush.bf16.msrb.mxu2 %v3577_v42  ;;  %3587 = vmatpush.bf16.msrb.mxu3 %v3577_v42 }
 0x21d   : > { %v1676_v8 = vpop.f32.mrf.mxu2 }
 0x21e   : > { %v1700_v41 = vadd.f32 %v1676_v8, %v1515_v19  ;;  %v1517_v60 = vpop.f32.mrf.mxu1  ;;  %1950 = vmatmul.bf16.gmra.mxu3 %v4876_v55  ;;  %v1013_v55 = vsel %vm974_vm1, %v1010_v9, %v1012_v58  ;;  %v1200_v9 = vpack.c.bf16 %v1097_v33, %v1097_v33  ;;  %v2133_v8 = vunpack.c.l.b16 %v1163_v51 }
 0x21f   : > { %v1054_v61 = vsel %vm947_vm2, 0.0, %v1013_v55  ;;  %v2269_v58 = vunpack.c.l.b16 %v1183_v62 }
 0x220   : > { %v4959_v56 = vadd.f32 %v1812_v20, %v1700_v41  ;;  %v1162_v50 = vpack.c.bf16 %v1054_v61, %v1054_v61  ;;  %v1996_v43 = vunpack.c.l.b16 %v1200_v9 }
 0x221   : > { %v1815_v63 = vpop.f32.mrf.mxu0  ;;  %v1372_v24 = vpop.f32.mrf.mxu3  ;;  %2086 = vmatmul.bf16.gmra.mxu1 %v4879_v49  ;;  %v2270_v29 = vpack.c.b16 %v2269_v58, %v2268_v39  ;;  %v3569_v39 = vld [vmem:[#allocation11 + $0x38] sm:$0xff] }
 0x222   : > { %v1518_v46 = vadd.f32 %v1517_v60, %v1372_v24  ;;  %2222 = vmatmul.bf16.gmra.mxu2 %v4885_v53  ;;  %v2132_v15 = vunpack.c.l.b16 %v1162_v50  ;;  %v4984_v25 = vpack.c.b16 %v1997_v26, %v1996_v43  ;;  %3579 = vmatpush.bf16.msrb.mxu1 %v3569_v39 }
 0x223   : > { %2633 = vmatpush.bf16.msrb.mxu0 %v3569_v39 }
 0x224   : > { %2358 = vmatmul.bf16.gmra.mxu0 %v1862_v0  ;;  %v2134_v24 = vpack.c.b16 %v2133_v8, %v2132_v15  ;;  %v3568_v15 = vld [vmem:[#allocation11 + $0x30] sm:$0xff] }
 0x225   : > { %v1679_v31 = vpop.f32.mrf.mxu2 }
 0x226   : > { %v1701_v37 = vadd.f32 %v1679_v31, %v1518_v46  ;;  %v1519_v53 = vpop.f32.mrf.mxu1  ;;  %3580 = vmatpush.bf16.msrb.mxu1 %v3568_v15 }
 0x227   : > { %2634 = vmatpush.bf16.msrb.mxu0 %v3568_v15 }
 0x228   : > { %v4982_v20 = vadd.f32 %v1815_v63, %v1701_v37 }
 0x229   : > { %v1374_v48 = vpop.f32.mrf.mxu3  ;;  %v1817_v19 = vpop.f32.mrf.mxu0 }
 0x22a   : > { %v1520_v6 = vadd.f32 %v1519_v53, %v1374_v48 }
 0x22d   : > { %v1681_v41 = vpop.f32.mrf.mxu2 }
 0x22e   : > { %v1702_v60 = vadd.f32 %v1681_v41, %v1520_v6  ;;  %1955 = vmatmul.bf16.gmra.mxu3 %v1862_v0  ;;  %v1522_v63 = vpop.f32.mrf.mxu1  ;;  %v3567_v41 = vld [vmem:[#allocation11 + $0x28] sm:$0xff] }
 0x22f   : > { %3581 = vmatpush.bf16.msrb.mxu1 %v3567_v41  ;;  %2635 = vmatpush.bf16.msrb.mxu0 %v3567_v41 }
 0x230   : > { %v4986_v46 = vadd.f32 %v1817_v19, %v1702_v60 }
 0x231   : > { %v1377_v55 = vpop.f32.mrf.mxu3  ;;  %2091 = vmatmul.bf16.gmra.mxu1 %v4984_v25  ;;  %v1820_v16 = vpop.f32.mrf.mxu0 }
 0x232   : > { %v1523_v33 = vadd.f32 %v1522_v63, %v1377_v55  ;;  %2227 = vmatmul.bf16.gmra.mxu2 %v2134_v24  ;;  %v1510_v55 = vadd.f32 %v4926_v13, %v4932_v12 }
 0x234   : > { %2363 = vmatmul.bf16.gmra.mxu0 %v2270_v29  ;;  %v3566_v29 = vld [vmem:[#allocation11 + $0x20] sm:$0xff] }
 0x235   : > { %v1684_v31 = vpop.f32.mrf.mxu2  ;;  %3582 = vmatpush.bf16.msrb.mxu1 %v3566_v29  ;;  %2636 = vmatpush.bf16.msrb.mxu0 %v3566_v29 }
 0x236   : > { %v1703_v45 = vadd.f32 %v1684_v31, %v1523_v33  ;;  %v1524_v0 = vpop.f32.mrf.mxu1 }
 0x238   : > { %v4989_v61 = vadd.f32 %v1820_v16, %v1703_v45  ;;  %v1698_v16 = vadd.f32 %v4935_v22, %v1510_v55  ;;  %v3785_v55 = vld [vmem:[%s4533_s25 + $0x10] sm:$0xff] }
 0x239   : > { %v1379_v37 = vpop.f32.mrf.mxu3  ;;  %v1822_v50 = vpop.f32.mrf.mxu0 }
 0x23a   : > { %v1525_v27 = vadd.f32 %v1524_v0, %v1379_v37 }
 0x23d   : > { %v1686_v53 = vpop.f32.mrf.mxu2 }
 0x23e   : > { %v1704_v9 = vadd.f32 %v1686_v53, %v1525_v27  ;;  %2464 = vmatmul.bf16.vlgmr.msra.gmra.mxu3 %v4737_v36  ;;  %v3576_v36 = vld [vmem:[#allocation13 + $0x30] sm:$0xff]  ;;  %v2057_v22 = vpop.f32.mrf.mxu1 }
 0x23f   : > { %2755 = vmatpush.bf16.msrb.mxu2 %v3576_v36  ;;  %3588 = vmatpush.bf16.msrb.mxu3 %v3576_v36 }
 0x240   : > { %v4992_v51 = vadd.f32 %v1822_v50, %v1704_v9  ;;  %v3571_v9 = vld [vmem:[#allocation13 + $0x8] sm:$0xff] }
 0x241   : > { %v1921_v62 = vpop.f32.mrf.mxu3 }
 0x242   : > { %v4995_v48 = vadd.f32 %v1921_v62, %v4894_v23 }
 0x245   : > { %v2193_v12 = vpop.f32.mrf.mxu2 }
 0x249   : > { %v1923_v19 = vpop.f32.mrf.mxu3 }
 0x24a   : > { %v4998_v43 = vadd.f32 %v1923_v19, %v4897_v7  ;;  %v3575_v7 = vld [vmem:[#allocation13 + $0x28] sm:$0xff] }
 0x24b   : > { %2756 = vmatpush.bf16.msrb.mxu2 %v3575_v7  ;;  %3589 = vmatpush.bf16.msrb.mxu3 %v3575_v7  ;;  %v3563_v19 = vld [vmem:[#allocation11 + $0x8] sm:$0xff]  ;;  %v3570_v7 = vld [vmem:[#allocation13] sm:$0xff] }
 0x24d   : > { %v2195_v42 = vpop.f32.mrf.mxu2 }
 0x24e   : > { %2469 = vmatmul.bf16.gmra.mxu3 %v4760_v10 }
 0x251   : > { %v1926_v26 = vpop.f32.mrf.mxu3 }
 0x252   : > { %v5002_v6 = vadd.f32 %v1926_v26, %v4902_v38 }
 0x259   : > { %v1928_v23 = vpop.f32.mrf.mxu3 }
 0x25a   : > { %v5005_v8 = vadd.f32 %v1928_v23, %v4905_v59  ;;  %v3574_v59 = vld [vmem:[#allocation13 + $0x20] sm:$0xff] }
 0x25b   : > { %2757 = vmatpush.bf16.msrb.mxu2 %v3574_v59  ;;  %3590 = vmatpush.bf16.msrb.mxu3 %v3574_v59 }
 0x25e   : > { %2474 = vmatmul.bf16.gmra.mxu3 %v4784_v54 }
 0x261   : > { %v1931_v10 = vpop.f32.mrf.mxu3 }
 0x262   : > { %v5009_v58 = vadd.f32 %v1931_v10, %v4910_v14 }
 0x269   : > { %v1933_v38 = vpop.f32.mrf.mxu3 }
 0x26a   : > { %v5012_v60 = vadd.f32 %v1933_v38, %v4913_v35  ;;  %v3573_v35 = vld [vmem:[#allocation13 + $0x18] sm:$0xff] }
 0x26b   : > { %2758 = vmatpush.bf16.msrb.mxu2 %v3573_v35  ;;  %3591 = vmatpush.bf16.msrb.mxu3 %v3573_v35  ;;  %v2097_v35 = vadd.f32 %v2057_v22, %v4995_v48 }
 0x26e   : > { %2479 = vmatmul.bf16.gmra.mxu3 %v4816_v47 }
 0x271   : > { %v1936_v54 = vpop.f32.mrf.mxu3 }
 0x272   : > { %v5016_v24 = vadd.f32 %v1936_v54, %v4918_v1  ;;  %v3565_v1 = vld [vmem:[#allocation11 + $0x18] sm:$0xff] }
 0x273   : > { %3583 = vmatpush.bf16.msrb.mxu1 %v3565_v1  ;;  %2637 = vmatpush.bf16.msrb.mxu0 %v3565_v1  ;;  %v3786_v1 = vld [vmem:[%s4533_s25 + $0x18] sm:$0xff] }
 0x274   : > { %v2683_v2 = vpack.c.bf16 %v3786_v1, %v3785_v55 }
 0x279   : > { %v1938_v14 = vpop.f32.mrf.mxu3 }
 0x27a   : > { %v5019_v63 = vadd.f32 %v1938_v14, %v4921_v44  ;;  %v1834_v44 = vadd.f32 %v4930_v30, %v1698_v16  ;;  %v1100_v30 = vrot.slane %v4956_v32, 1 }
 0x27c   : > { %v1101_v62 = vsel %vm1062_vm4, %v1098_v57, %v1100_v30  ;;  %v2198_v57 = vpop.f32.mrf.mxu2 }
 0x27e   : > { %2484 = vmatmul.bf16.gmra.mxu3 %v4848_v5  ;;  %v3572_v5 = vld [vmem:[#allocation13 + $0x10] sm:$0xff] }
 0x27f   : > { %2759 = vmatpush.bf16.msrb.mxu2 %v3572_v5  ;;  %3592 = vmatpush.bf16.msrb.mxu3 %v3572_v5  ;;  %v5072_v5 = vld [vmem:[%s5352_s13] ss:$0 sm:$0xff] }
 0x281   : > { %v1941_v47 = vpop.f32.mrf.mxu3 }
 0x282   : > { %v5025_v33 = vadd.f32 %v1941_v47, %v4928_v11  ;;  %v3564_v11 = vld [vmem:[#allocation11 + $0x10] sm:$0xff] }
 0x283   : > { %3584 = vmatpush.bf16.msrb.mxu1 %v3564_v11  ;;  %2638 = vmatpush.bf16.msrb.mxu0 %v3564_v11 }
 0x284   : > { %2760 = vmatpush.bf16.msrb.mxu2 %v3571_v9  ;;  %3593 = vmatpush.bf16.msrb.mxu3 %v3571_v9  ;;  %v2200_v59 = vpop.f32.mrf.mxu2  ;;  %v3788_v9 = vld [vmem:[%s4533_s25 + $0x28] sm:$0xff] }
 0x287   : > { %3585 = vmatpush.bf16.msrb.mxu1 %v3563_v19  ;;  %2639 = vmatpush.bf16.msrb.mxu0 %v3563_v19 }
 0x288   : > { %2761 = vmatpush.bf16.msrb.mxu2 %v3570_v7  ;;  %3594 = vmatpush.bf16.msrb.mxu3 %v3570_v7 }
 0x289   : > { %v1943_v31 = vpop.f32.mrf.mxu3 }
 0x28a   : > { %v5029_v45 = vadd.f32 %v1943_v31, %v1834_v44 }
 0x28b   : > { %2762 = vmatmul.bf16.vlgmr.msrb.gmra.mxu2 %v2682_v4  ;;  %v2233_v4 = vadd.f32 %v2193_v12, %v2097_v35 }
 0x28c   : > { %v2203_v3 = vpop.f32.mrf.mxu2 }
 0x28e   : > { %2489 = vmatmul.bf16.gmra.mxu3 %v4879_v49  ;;  %v1102_v49 = vrot.slane %v4179_v28, 1  ;;  %v2059_v28 = vpop.f32.mrf.mxu1 }
 0x290   : > { %v1103_v53 = vsel %vm1062_vm4, %v1100_v30, %v1102_v49 }
 0x291   : > { %v1946_v37 = vpop.f32.mrf.mxu3  ;;  %v1143_v32 = vsel %vm1057_vm3, 0.0, %v1103_v53  ;;  %v3787_v53 = vld [vmem:[%s4533_s25 + $0x20] sm:$0xff] }
 0x292   : > { %v5033_v13 = vadd.f32 %v1946_v37, %v4949_v52  ;;  %v2329_v52 = vpop.f32.mrf.mxu0  ;;  %v1203_v39 = vpack.c.bf16 %v1143_v32, %v1143_v32 }
 0x293   : > { %v2369_v31 = vadd.f32 %v2329_v52, %v2233_v4  ;;  %v2684_v52 = vpack.c.bf16 %v3788_v9, %v3787_v53 }
 0x294   : > { %v2405_v26 = vunpack.c.l.b16 %v1203_v39  ;;  %v2205_v18 = vpop.f32.mrf.mxu2 }
 0x296   : > { %v2062_v10 = vpop.f32.mrf.mxu1 }
 0x297   : > { %v2099_v22 = vadd.f32 %v2062_v10, %v5002_v6 }
 0x299   : > { %v1948_v0 = vpop.f32.mrf.mxu3 }
 0x29a   : > { %v5037_v27 = vadd.f32 %v1948_v0, %v4959_v56  ;;  %v2331_v23 = vpop.f32.mrf.mxu0 }
 0x29b   : > { %2767 = vmatmul.bf16.gmra.mxu2 %v2683_v2 }
 0x29e   : > { %2494 = vmatmul.bf16.gmra.mxu3 %v4984_v25  ;;  %v1202_v25 = vpack.c.bf16 %v1101_v62, %v1101_v62  ;;  %v2064_v54 = vpop.f32.mrf.mxu1 }
 0x2a0   : > { %v2404_v36 = vunpack.c.l.b16 %v1202_v25  ;;  %v2208_v25 = vpop.f32.mrf.mxu2 }
 0x2a1   : > { %v1951_v50 = vpop.f32.mrf.mxu3 }
 0x2a2   : > { %v5048_v56 = vadd.f32 %v1951_v50, %v4982_v20  ;;  %v2406_v40 = vpack.c.b16 %v2405_v26, %v2404_v36  ;;  %v3562_v20 = vld [vmem:[#allocation11] sm:$0xff]  ;;  %v2334_v38 = vpop.f32.mrf.mxu0  ;;  %v2100_v50 = vadd.f32 %v2064_v54, %v5005_v8  ;;  %v3789_v54 = vld [vmem:[%s4533_s25 + $0x30] sm:$0xff] }
 0x2a3   : > { %2640 = vmatpush.bf16.msrb.mxu0 %v3562_v20  ;;  %3586 = vmatpush.bf16.msrb.mxu1 %v3562_v20 }
 0x2a4   : > { %v2236_v39 = vadd.f32 %v2200_v59, %v2100_v50 }
 0x2a6   : > { %v2067_v16 = vpop.f32.mrf.mxu1 }
 0x2a8   : > { %v2210_v10 = vpop.f32.mrf.mxu2 }
 0x2a9   : > { %v1953_v15 = vpop.f32.mrf.mxu3 }
 0x2aa   : > { %v5051_v34 = vadd.f32 %v1953_v15, %v4986_v46  ;;  %v2336_v47 = vpop.f32.mrf.mxu0 }
 0x2ab   : > { %2772 = vmatmul.bf16.gmra.mxu2 %v2684_v52  ;;  %v2372_v26 = vadd.f32 %v2336_v47, %v2236_v39 }
 0x2ae   : > { %2499 = vmatmul.bf16.gmra.mxu3 %v2406_v40  ;;  %v2069_v12 = vpop.f32.mrf.mxu1 }
 0x2af   : > { %v2102_v55 = vadd.f32 %v2069_v12, %v5012_v60  ;;  %v3792_v12 = vld [vmem:[%s4533_s25 + $0x48] sm:$0xff] }
 0x2b1   : > { %v1956_v41 = vpop.f32.mrf.mxu3 }
 0x2b2   : > { %v5057_v46 = vadd.f32 %v1956_v41, %v4989_v61  ;;  %v2098_v61 = vadd.f32 %v2059_v28, %v4998_v43  ;;  %v2339_v37 = vpop.f32.mrf.mxu0 }
 0x2b6   : > { %v2072_v19 = vpop.f32.mrf.mxu1 }
 0x2b9   : > { %v1958_v29 = vpop.f32.mrf.mxu3 }
 0x2ba   : > { %v5060_v14 = vadd.f32 %v1958_v29, %v4992_v51  ;;  %v2234_v51 = vadd.f32 %v2195_v42, %v2098_v61  ;;  %v2235_v42 = vadd.f32 %v2198_v57, %v2099_v22  ;;  %v2341_v28 = vpop.f32.mrf.mxu0  ;;  %v2101_v57 = vadd.f32 %v2067_v16, %v5009_v58  ;;  %v3790_v29 = vld [vmem:[%s4533_s25 + $0x38] sm:$0xff]  ;;  %v2213_v16 = vpop.f32.mrf.mxu2 }
 0x2bb   : > { %v2685_v35 = vpack.c.bf16 %v3790_v29, %v3789_v54  ;;  %v2238_v58 = vadd.f32 %v2205_v18, %v2102_v55 }
 0x2bc   : > { %v2370_v17 = vadd.f32 %v2331_v23, %v2234_v51  ;;  %v2371_v6 = vadd.f32 %v2334_v38, %v2235_v42  ;;  %v2237_v38 = vadd.f32 %v2203_v3, %v2101_v57  ;;  %v2103_v3 = vadd.f32 %v2072_v19, %v5016_v24 }
 0x2bd   : > { %2777 = vmatmul.bf16.gmra.mxu2 %v2685_v35 }
 0x2be   : > { %2797 = vmatmul.bf16.vlgmr.msrb.gmra.mxu3 %v2689_v21  ;;  %v2074_v59 = vpop.f32.mrf.mxu1  ;;  %v2373_v2 = vadd.f32 %v2339_v37, %v2237_v38  ;;  %v2239_v18 = vadd.f32 %v2208_v25, %v2103_v3 }
 0x2bf   : > { %v2104_v37 = vadd.f32 %v2074_v59, %v5019_v63 }
 0x2c1   : > { %v2465_v44 = vpop.f32.mrf.mxu3  ;;  %v2240_v24 = vadd.f32 %v2210_v10, %v2104_v37 }
 0x2c2   : > { %v2505_v48 = vadd.f32 %v2465_v44, %v2369_v31  ;;  %v2344_v8 = vpop.f32.mrf.mxu0  ;;  %v2374_v44 = vadd.f32 %v2341_v28, %v2238_v58 }
 0x2c3   : > { %v2375_v52 = vadd.f32 %v2344_v8, %v2239_v18 }
 0x2c4   : > { %v2525_v11 = vadd.f32 %v5072_v5, %v2505_v48 }
 0x2c6   : > { %v2541_v30 = vmax.f32 %v2525_v11, 0.0  ;;  %v2077_v51 = vpop.f32.mrf.mxu1 }
 0x2c7   : > { %v2105_v63 = vadd.f32 %v2077_v51, %v5025_v33 }
 0x2c9   : > { %v2467_v21 = vpop.f32.mrf.mxu3  ;;  %v2241_v57 = vadd.f32 %v2213_v16, %v2105_v63  ;;  %v3796_v16 = vld [vmem:[%s4533_s25 + $0x68] sm:$0xff] }
 0x2ca   : > { %v2506_v43 = vadd.f32 %v2467_v21, %v2370_v17  ;;  %v2346_v4 = vpop.f32.mrf.mxu0 }
 0x2cb   : > { %v2376_v50 = vadd.f32 %v2346_v4, %v2240_v24 }
 0x2cc   : > { %v2526_v0 = vadd.f32 %v5072_v5, %v2506_v43  ;;  %v3791_v43 = vld [vmem:[%s4533_s25 + $0x40] sm:$0xff] }
 0x2cd   : > { %v2686_v22 = vpack.c.bf16 %v3792_v12, %v3791_v43 }
 0x2ce   : > { %v2542_v49 = vmax.f32 %v2526_v0, 0.0  ;;  %v2079_v9 = vpop.f32.mrf.mxu1 }
 0x2cf   : > { %2782 = vmatmul.bf16.gmra.mxu2 %v2686_v22  ;;  %v2106_v8 = vadd.f32 %v2079_v9, %v5029_v45 }
 0x2d0   : > { %v2557_v62 = vpack.c.bf16 %v2542_v49, %v2541_v30  ;;  %v2215_v49 = vpop.f32.mrf.mxu2 }
 0x2d1   : > { %v2470_v32 = vpop.f32.mrf.mxu3 }
 0x2d2   : > { %2641 = vmatmul.bf16.vlgmr.msrb.gmra.mxu0 %v2557_v62  ;;  %v2507_v36 = vadd.f32 %v2470_v32, %v2371_v6  ;;  %v2349_v0 = vpop.f32.mrf.mxu0 }
 0x2d3   : > { %v2377_v33 = vadd.f32 %v2349_v0, %v2241_v57 }
 0x2d4   : > { %v2527_v23 = vadd.f32 %v5072_v5, %v2507_v36 }
 0x2d6   : > { %v2543_v20 = vmax.f32 %v2527_v23, 0.0  ;;  %v2082_v19 = vpop.f32.mrf.mxu1  ;;  %v3794_v23 = vld [vmem:[%s4533_s25 + $0x58] sm:$0xff] }
 0x2d8   : > { %v2218_v39 = vpop.f32.mrf.mxu2 }
 0x2d9   : > { %v2472_v15 = vpop.f32.mrf.mxu3 }
 0x2da   : > { %v2508_v7 = vadd.f32 %v2472_v15, %v2372_v26  ;;  %v2351_v32 = vpop.f32.mrf.mxu0  ;;  %v3793_v15 = vld [vmem:[%s4533_s25 + $0x50] sm:$0xff] }
 0x2dc   : > { %v2528_v40 = vadd.f32 %v5072_v5, %v2508_v7  ;;  %v2687_v7 = vpack.c.bf16 %v3794_v23, %v3793_v15 }
 0x2de   : > { %v2544_v41 = vmax.f32 %v2528_v40, 0.0  ;;  %v2084_v35 = vpop.f32.mrf.mxu1 }
 0x2df   : > { %2787 = vmatmul.bf16.gmra.mxu2 %v2687_v7 }
 0x2e0   : > { %v2558_v47 = vpack.c.bf16 %v2544_v41, %v2543_v20  ;;  %v2242_v20 = vadd.f32 %v2215_v49, %v2106_v8  ;;  %v2220_v54 = vpop.f32.mrf.mxu2 }
 0x2e1   : > { %v2475_v1 = vpop.f32.mrf.mxu3 }
 0x2e2   : > { %2646 = vmatmul.bf16.vlgmr.msrb.gmra.mxu1 %v2558_v47  ;;  %v2509_v61 = vadd.f32 %v2475_v1, %v2373_v2  ;;  %v2354_v41 = vpop.f32.mrf.mxu0  ;;  %v2378_v59 = vadd.f32 %v2351_v32, %v2242_v20  ;;  %v2107_v1 = vadd.f32 %v2082_v19, %v5033_v13 }
 0x2e4   : > { %v2529_v48 = vadd.f32 %v5072_v5, %v2509_v61  ;;  %v3795_v61 = vld [vmem:[%s4533_s25 + $0x60] sm:$0xff] }
 0x2e6   : > { %v2545_v21 = vmax.f32 %v2529_v48, 0.0  ;;  %v2108_v48 = vadd.f32 %v2084_v35, %v5037_v27  ;;  %v2087_v3 = vpop.f32.mrf.mxu1 }
 0x2e7   : > { %v2109_v49 = vadd.f32 %v2087_v3, %v5048_v56 }
 0x2e8   : > { %v2223_v51 = vpop.f32.mrf.mxu2 }
 0x2e9   : > { %v2477_v31 = vpop.f32.mrf.mxu3  ;;  %v2245_v24 = vadd.f32 %v2223_v51, %v2109_v49  ;;  %v5123_v51 = vld [vmem:[%s5354_s12] ss:$0 sm:$0xff] }
 0x2ea   : > { %v2510_v17 = vadd.f32 %v2477_v31, %v2374_v44  ;;  %v2356_v58 = vpop.f32.mrf.mxu0  ;;  %v2688_v44 = vpack.c.bf16 %v3796_v16, %v3795_v61  ;;  %v2243_v31 = vadd.f32 %v2218_v39, %v2107_v1  ;;  %v5117_v61 = vld [vmem:[%s5353_s17] ss:$0 sm:$0xff] }
 0x2ec   : > { %v2530_v60 = vadd.f32 %v5072_v5, %v2510_v17 }
 0x2ee   : > { %v2546_v11 = vmax.f32 %v2530_v60, 0.0 }
 0x2ef   : > { %2792 = vmatmul.bf16.gmra.mxu2 %v2688_v44 }
 0x2f0   : > { %v2559_v30 = vpack.c.bf16 %v2546_v11, %v2545_v21  ;;  %v2244_v21 = vadd.f32 %v2220_v54, %v2108_v48  ;;  %v2379_v11 = vadd.f32 %v2354_v41, %v2243_v31  ;;  %v2225_v22 = vpop.f32.mrf.mxu2 }
 0x2f1   : > { %v2480_v53 = vpop.f32.mrf.mxu3 }
 0x2f2   : > { %2651 = vmatmul.bf16.gmra.mxu1 %v2559_v30  ;;  %v2511_v42 = vadd.f32 %v2480_v53, %v2375_v52  ;;  %v2359_v43 = vpop.f32.mrf.mxu0  ;;  %v2380_v12 = vadd.f32 %v2356_v58, %v2244_v21  ;;  %v2089_v30 = vpop.f32.mrf.mxu1 }
 0x2f3   : > { %v2110_v52 = vadd.f32 %v2089_v30, %v5051_v34 }
 0x2f4   : > { %v2531_v28 = vadd.f32 %v5072_v5, %v2511_v42 }
 0x2f6   : > { %v2547_v36 = vmax.f32 %v2531_v28, 0.0  ;;  %v2246_v28 = vadd.f32 %v2225_v22, %v2110_v52 }
 0x2f8   : > { %v2228_v32 = vpop.f32.mrf.mxu2 }
 0x2f9   : > { %v2482_v62 = vpop.f32.mrf.mxu3 }
 0x2fa   : > { %v2512_v25 = vadd.f32 %v2482_v62, %v2376_v50  ;;  %v2361_v62 = vpop.f32.mrf.mxu0  ;;  %v2092_v39 = vpop.f32.mrf.mxu1 }
 0x2fc   : > { %v2532_v6 = vadd.f32 %v5072_v5, %v2512_v25  ;;  %v2381_v25 = vadd.f32 %v2359_v43, %v2245_v24 }
 0x2fe   : > { %v2548_v26 = vmax.f32 %v2532_v6, 0.0  ;;  %v2382_v6 = vadd.f32 %v2361_v62, %v2246_v28 }
 0x300   : > { %v2560_v40 = vpack.c.bf16 %v2548_v26, %v2547_v36  ;;  %v2111_v26 = vadd.f32 %v2092_v39, %v5057_v46  ;;  %v2230_v34 = vpop.f32.mrf.mxu2 }
 0x301   : > { %v2485_v10 = vpop.f32.mrf.mxu3 }
 0x302   : > { %2656 = vmatmul.bf16.gmra.mxu1 %v2560_v40  ;;  %v2513_v29 = vadd.f32 %v2485_v10, %v2377_v33  ;;  %v2364_v23 = vpop.f32.mrf.mxu0  ;;  %v2094_v8 = vpop.f32.mrf.mxu1  ;;  %v2247_v40 = vadd.f32 %v2228_v32, %v2111_v26 }
 0x303   : > { %v2112_v10 = vadd.f32 %v2094_v8, %v5060_v14 }
 0x304   : > { %v2533_v55 = vadd.f32 %v5072_v5, %v2513_v29  ;;  %v2383_v54 = vadd.f32 %v2364_v23, %v2247_v40 }
 0x305   : > { %v2248_v33 = vadd.f32 %v2230_v34, %v2112_v10 }
 0x306   : > { %v2549_v2 = vmax.f32 %v2533_v55, 0.0 }
 0x309   : > { %v2487_v38 = vpop.f32.mrf.mxu3 }
 0x30a   : > { %v2514_v47 = vadd.f32 %v2487_v38, %v2378_v59  ;;  %v2366_v59 = vpop.f32.mrf.mxu0 }
 0x30b   : > { %v2384_v38 = vadd.f32 %v2366_v59, %v2248_v33 }
 0x30c   : > { %v2534_v45 = vadd.f32 %v5072_v5, %v2514_v47 }
 0x30e   : > { %v2550_v4 = vmax.f32 %v2534_v45, 0.0  ;;  %v2763_v29 = vpop.f32.mrf.mxu2 }
 0x310   : > { %v2561_v17 = vpack.c.bf16 %v2550_v4, %v2549_v2 }
 0x311   : > { %v2490_v60 = vpop.f32.mrf.mxu3 }
 0x312   : > { %2661 = vmatmul.bf16.gmra.mxu1 %v2561_v17  ;;  %v2515_v13 = vadd.f32 %v2490_v60, %v2379_v11 }
 0x314   : > { %v2535_v37 = vadd.f32 %v5072_v5, %v2515_v13 }
 0x316   : > { %v2551_v53 = vmax.f32 %v2535_v37, 0.0  ;;  %v2765_v2 = vpop.f32.mrf.mxu2 }
 0x319   : > { %v2492_v18 = vpop.f32.mrf.mxu3 }
 0x31a   : > { %v2516_v0 = vadd.f32 %v2492_v18, %v2380_v12 }
 0x31c   : > { %v2536_v27 = vadd.f32 %v5072_v5, %v2516_v0 }
 0x31e   : > { %v2552_v9 = vmax.f32 %v2536_v27, 0.0  ;;  %v2768_v4 = vpop.f32.mrf.mxu2 }
 0x320   : > { %v2562_v42 = vpack.c.bf16 %v2552_v9, %v2551_v53 }
 0x321   : > { %v2495_v50 = vpop.f32.mrf.mxu3 }
 0x322   : > { %2666 = vmatmul.bf16.gmra.mxu1 %v2562_v42  ;;  %v2517_v63 = vadd.f32 %v2495_v50, %v2381_v25 }
 0x324   : > { %v2537_v56 = vadd.f32 %v5072_v5, %v2517_v63 }
 0x326   : > { %v2553_v7 = vmax.f32 %v2537_v56, 0.0  ;;  %v2770_v31 = vpop.f32.mrf.mxu2 }
 0x329   : > { %v2497_v19 = vpop.f32.mrf.mxu3 }
 0x32a   : > { %v2518_v36 = vadd.f32 %v2497_v19, %v2382_v6 }
 0x32c   : > { %v2538_v15 = vadd.f32 %v5072_v5, %v2518_v36 }
 0x32e   : > { %v2554_v57 = vmax.f32 %v2538_v15, 0.0  ;;  %v2773_v11 = vpop.f32.mrf.mxu2 }
 0x330   : > { %v2563_v20 = vpack.c.bf16 %v2554_v57, %v2553_v7 }
 0x331   : > { %v2500_v41 = vpop.f32.mrf.mxu3 }
 0x332   : > { %2671 = vmatmul.bf16.gmra.mxu1 %v2563_v20  ;;  %v2519_v35 = vadd.f32 %v2500_v41, %v2383_v54 }
 0x334   : > { %v2539_v55 = vadd.f32 %v5072_v5, %v2519_v35 }
 0x336   : > { %v2555_v45 = vmax.f32 %v2539_v55, 0.0  ;;  %v2775_v37 = vpop.f32.mrf.mxu2 }
 0x339   : > { %v2502_v46 = vpop.f32.mrf.mxu3 }
 0x33a   : > { %v2520_v47 = vadd.f32 %v2502_v46, %v2384_v38 }
 0x33c   : > { %v2540_v1 = vadd.f32 %v5072_v5, %v2520_v47 }
 0x33e   : > { %v2556_v58 = vmax.f32 %v2540_v1, 0.0 }
 0x340   : > { %v2564_v14 = vpack.c.bf16 %v2556_v58, %v2555_v45  ;;  %v2778_v9 = vpop.f32.mrf.mxu2 }
 0x342   : > { %2676 = vmatmul.bf16.gmra.mxu1 %v2564_v14 }
 0x348   : > { %v2780_v32 = vpop.f32.mrf.mxu2 }
 0x34f   : > { %v2642_v16 = vpop.f32.mrf.mxu0 }
 0x350   : > { %v2643_v44 = vadd.f32 %v5117_v61, %v2642_v16 }
 0x352   : > { %v2803_v5 = vadd.f32 %v2763_v29, %v2643_v44  ;;  %v2783_v19 = vpop.f32.mrf.mxu2 }
 0x354   : > { %v2823_v48 = vadd.f32 %v5123_v51, %v2803_v5 }
 0x356   : > { %2839 = vst [vmem:[%s5128_s22] sm:$0xff] %v2823_v48 }
 0x357   : > { %v2644_v17 = vpop.f32.mrf.mxu0 }
 0x358   : > { %v2645_v3 = vadd.f32 %v5117_v61, %v2644_v17  ;;  %v2798_v17 = vpop.f32.mrf.mxu3 }
 0x35a   : > { %v2804_v60 = vadd.f32 %v2765_v2, %v2645_v3  ;;  %v2785_v34 = vpop.f32.mrf.mxu2 }
 0x35c   : > { %v2824_v21 = vadd.f32 %v5123_v51, %v2804_v60 }
 0x35e   : > { %2840 = vst [vmem:[%s5128_s22 + $0x8] sm:$0xff] %v2824_v21 }
 0x35f   : > { %v2647_v13 = vpop.f32.mrf.mxu1 }
 0x360   : > { %v2648_v43 = vadd.f32 %v5117_v61, %v2647_v13 }
 0x362   : > { %v2805_v12 = vadd.f32 %v2768_v4, %v2648_v43  ;;  %v2788_v20 = vpop.f32.mrf.mxu2 }
 0x364   : > { %v2825_v22 = vadd.f32 %v5123_v51, %v2805_v12  ;;  %v2800_v12 = vpop.f32.mrf.mxu3 }
 0x366   : > { %2841 = vst [vmem:[%s5128_s22 + $0x10] sm:$0xff] %v2825_v22 }
 0x367   : > { %v2649_v18 = vpop.f32.mrf.mxu1 }
 0x368   : > { %v2650_v0 = vadd.f32 %v5117_v61, %v2649_v18 }
 0x36a   : > { %v2806_v30 = vadd.f32 %v2770_v31, %v2650_v0  ;;  %v2790_v59 = vpop.f32.mrf.mxu2 }
 0x36c   : > { %v2826_v49 = vadd.f32 %v5123_v51, %v2806_v30 }
 0x36e   : > { %2842 = vst [vmem:[%s5128_s22 + $0x18] sm:$0xff] %v2826_v49 }
 0x36f   : > { %v2652_v27 = vpop.f32.mrf.mxu1 }
 0x370   : > { %v2653_v53 = vadd.f32 %v5117_v61, %v2652_v27 }
 0x372   : > { %v2807_v24 = vadd.f32 %v2773_v11, %v2653_v53  ;;  %v2793_v45 = vpop.f32.mrf.mxu2 }
 0x374   : > { %v2827_v52 = vadd.f32 %v5123_v51, %v2807_v24 }
 0x376   : > { %2843 = vst [vmem:[%s5128_s22 + $0x20] sm:$0xff] %v2827_v52 }
 0x377   : > { %v2654_v42 = vpop.f32.mrf.mxu1 }
 0x378   : > { %v2655_v50 = vadd.f32 %v5117_v61, %v2654_v42 }
 0x37a   : > { %v2808_v62 = vadd.f32 %v2775_v37, %v2655_v50  ;;  %v2795_v44 = vpop.f32.mrf.mxu2 }
 0x37c   : > { %v2828_v28 = vadd.f32 %v5123_v51, %v2808_v62 }
 0x37e   : > { %2844 = vst [vmem:[%s5128_s22 + $0x28] sm:$0xff] %v2828_v28 }
 0x37f   : > { %v2657_v25 = vpop.f32.mrf.mxu1 }
 0x380   : > { %v2658_v39 = vadd.f32 %v5117_v61, %v2657_v25 }
 0x382   : > { %v2809_v63 = vadd.f32 %v2778_v9, %v2658_v39 }
 0x384   : > { %v2829_v6 = vadd.f32 %v5123_v51, %v2809_v63 }
 0x386   : > { %2845 = vst [vmem:[%s5128_s22 + $0x30] sm:$0xff] %v2829_v6 }
 0x387   : > { %v2659_v56 = vpop.f32.mrf.mxu1 }
 0x388   : > { %v2660_v36 = vadd.f32 %v5117_v61, %v2659_v56 }
 0x38a   : > { %v2810_v26 = vadd.f32 %v2780_v32, %v2660_v36 }
 0x38c   : > { %v2830_v15 = vadd.f32 %v5123_v51, %v2810_v26 }
 0x38e   : > { %2846 = vst [vmem:[%s5128_s22 + $0x38] sm:$0xff] %v2830_v15 }
 0x38f   : > { %v2662_v23 = vpop.f32.mrf.mxu1 }
 0x390   : > { %v2663_v7 = vadd.f32 %v5117_v61, %v2662_v23 }
 0x392   : > { %v2811_v57 = vadd.f32 %v2783_v19, %v2663_v7 }
 0x394   : > { %v2831_v8 = vadd.f32 %v5123_v51, %v2811_v57 }
 0x396   : > { %2847 = vst [vmem:[%s5128_s22 + $0x40] sm:$0xff] %v2831_v8 }
 0x397   : > { %v2664_v40 = vpop.f32.mrf.mxu1 }
 0x398   : > { %v2665_v10 = vadd.f32 %v5117_v61, %v2664_v40 }
 0x39a   : > { %v2812_v41 = vadd.f32 %v2785_v34, %v2665_v10 }
 0x39c   : > { %v2832_v33 = vadd.f32 %v5123_v51, %v2812_v41 }
 0x39e   : > { %2848 = vst [vmem:[%s5128_s22 + $0x48] sm:$0xff] %v2832_v33 }
 0x39f   : > { %v2667_v54 = vpop.f32.mrf.mxu1 }
 0x3a0   : > { %v2668_v29 = vadd.f32 %v5117_v61, %v2667_v54 }
 0x3a2   : > { %v2813_v35 = vadd.f32 %v2788_v20, %v2668_v29 }
 0x3a4   : > { %v2833_v38 = vadd.f32 %v5123_v51, %v2813_v35 }
 0x3a6   : > { %2849 = vst [vmem:[%s5128_s22 + $0x50] sm:$0xff] %v2833_v38 }
 0x3a7   : > { %v2669_v46 = vpop.f32.mrf.mxu1 }
 0x3a8   : > { %v2670_v55 = vadd.f32 %v5117_v61, %v2669_v46 }
 0x3aa   : > { %v2814_v47 = vadd.f32 %v2790_v59, %v2670_v55 }
 0x3ac   : > { %v2834_v1 = vadd.f32 %v5123_v51, %v2814_v47 }
 0x3ae   : > { %2850 = vst [vmem:[%s5128_s22 + $0x58] sm:$0xff] %v2834_v1 }
 0x3af   : > { %v2672_v58 = vpop.f32.mrf.mxu1 }
 0x3b0   : > { %v2673_v2 = vadd.f32 %v5117_v61, %v2672_v58 }
 0x3b2   : > { %v2815_v14 = vadd.f32 %v2793_v45, %v2673_v2 }
 0x3b4   : > { %v2835_v4 = vadd.f32 %v5123_v51, %v2815_v14 }
 0x3b6   : > { %2851 = vst [vmem:[%s5128_s22 + $0x60] sm:$0xff] %v2835_v4 }
 0x3b7   : > { %v2674_v16 = vpop.f32.mrf.mxu1 }
 0x3b8   : > { %v2675_v5 = vadd.f32 %v5117_v61, %v2674_v16 }
 0x3ba   : > { %v2816_v31 = vadd.f32 %v2795_v44, %v2675_v5 }
 0x3bc   : > { %v2836_v48 = vadd.f32 %v5123_v51, %v2816_v31 }
 0x3be   : > { %2852 = vst [vmem:[%s5128_s22 + $0x68] sm:$0xff] %v2836_v48 }
 0x3bf   : > { %v2677_v3 = vpop.f32.mrf.mxu1 }
 0x3c0   : > { %v2678_v60 = vadd.f32 %v5117_v61, %v2677_v3 }
 0x3c2   : > { %v2817_v21 = vadd.f32 %v2798_v17, %v2678_v60 }
 0x3c4   : > { %v2837_v11 = vadd.f32 %v5123_v51, %v2817_v21 }
 0x3c6   : > { %2853 = vst [vmem:[%s5128_s22 + $0x70] sm:$0xff] %v2837_v11 }
 0x3c7   : > { %v2679_v13 = vpop.f32.mrf.mxu1 }
 0x3c8   : > { %v2680_v43 = vadd.f32 %v5117_v61, %v2679_v13 }
 0x3ca   : > { %v2818_v22 = vadd.f32 %v2800_v12, %v2680_v43 }
 0x3cc   : > { %v2838_v18 = vadd.f32 %v5123_v51, %v2818_v22 }
 0x3ce   : > { %2854 = vst [vmem:[%s5128_s22 + $0x78] sm:$0xff] %v2838_v18 }
 0x3cf   : > { %4034 = shalt.err (!%p4031_p10)
}
 0x3d0   : > { %s4180_s9 = smov 128   ;;  %s4181_s23 = smov 8  }
 0x3d1   : > { %3617 = dma.vmem_to_hbm [thread:$0]  (%p4463_p5), %s2872_s7, 2048, %s2874_s0, %s2856_s5, %s4180_s9, %s4180_s9, %s4181_s23  }
 0x3d2 PF: > { %p3655_p11 = scmp.ge.s32.totalorder %s4169_s21, 2  ;;  %s2888_s12 = sand.u32 1, %s4141_s14  }
 0x3d3   : > { %s2889_s22 = scalar_lea.sflag [#allocation4], %s2888_s12 }
 0x3d4   : > { %p3643_p7 = pnand %p3655_p11, %p4467_p12 }
 0x3d6   : > { %p3644_p2 = pneg %p3643_p7 }
 0x3d8   : > { %4112 = dma.done.wait (%p3644_p2), %s2889_s22, 2048  }
 0x3d9   : > { %4114 = vsyncadd (%p3644_p2), %s2889_s22, 4294965248  ;;  %s34_s21 = sadd.s32 1, %s4169_s21   ;;  %s5358_s25 = sld [smem:[#allocation22_spill]] }
 0x3da   : > { %p5198_p1 = scmp.ge.s32.totalorder %s34_s21, 6   ;;  %s5359_s26 = sld [smem:[#allocation23_spill]] }
 0x3db   : > { %s5360_s6 = sld [smem:[#allocation24_spill]]  ;;  %s5361_s16 = smov %s4402_s28 }
 0x3dc   : > { %s5362_s2 = sld [smem:[#allocation25_spill]]  ;;  %s5368_s27 = smov %s5391_s18 }
 0x3dd   : > { %s5363_s10 = sld [smem:[#allocation36_spill]]  ;;  %s5370_s29 = smov %s4137_s30 }
 0x3de   : > { %s5364_s17 = sld [smem:[#allocation28_spill]]  ;;  %s5371_s30 = smov %s5361_s16 }
 0x3df   : > { %s5365_s4 = sld [smem:[#allocation29_spill]]  ;;  %s5372_s14 = smov %s4145_s15 }
 0x3e0   : > { %s5366_s19 = sld [smem:[#allocation31_spill]] }
 0x3e1   : > { %s5367_s20 = sld [smem:[#allocation32_spill]]  ;;  %s5369_s28 = smov %s5360_s6 }
 0x3e2   : > { %s5373_s15 = smov %s5362_s2  ;;  %33 = sbr.rel (!%p5198_p1) target bundleno = 29 (0x1d), region = 165 }
 0x3e3   : > { %s5374_s16 = smov %s5363_s10 }
 0x3e5   : > { %s5375_s18 = smov %s5365_s4 }
 0x3e7   :  { %2895 = vsyncpa [#allocation3], 1 }
 0x3e8   :  { %2897 = vsyncpa [#allocation3 + $0x1], 1 }
 0x3e9   :  { %2898 = vsyncpa [#allocation6], 1 }
 0x3ea   :  { %2900 = vsyncpa [#allocation6 + $0x1], 1 }
 0x3eb   :  { %2901 = vsyncpa [#allocation9], 1 }
 0x3ec   :  { %2902 = vsyncpa [#allocation12], 1 }
 0x3ed   :  { %2903 = vsyncpa [#allocation4], 1 }
 0x3ee   :  { %2905 = vsyncpa [#allocation4 + $0x1], 1 }

</bundles_post_ra>
